<compile_context>
chip_gen: v6e
topology: v6e:2x2x1
jax: 0.10.0
libtpu: 0.0.40
codegen_flags: <defaults>
</compile_context>

<pallas_src>
import math
from functools import partial

import jax
import jax.numpy as jnp
from jax.experimental import pallas as pl
from jax.experimental.pallas import tpu as pltpu

LN_EPS = 1e-5              # F.layer_norm default eps (VITS LayerNorm)
NEG_INF = -1e4             # VITS masked_fill value
MXU_DTYPE = jnp.bfloat16   # MXU operand dtype; accumulation stays f32


def _layer_norm(x, gamma, beta):
    mu = jnp.mean(x, axis=-1, keepdims=True)
    var = jnp.mean(jnp.square(x - mu), axis=-1, keepdims=True)
    return (x - mu) * jax.lax.rsqrt(var + LN_EPS) * gamma + beta


# ------------------------------ fused kernel ------------------------------- #

def encoder_stack_kernel(lens_ref,                                   # SMEM [B]
                         x_ref,                                      # [T, H]
                         wqkv_ref, bqkv_ref, wo_ref, bo_ref,
                         g1_ref, b1_ref,
                         fw1_ref, fb1_ref, fw2_ref, fb2_ref,
                         g2_ref, b2_ref,
                         pw_ref, pb_ref,
                         xo_ref, st_ref,                             # outputs
                         xs_ref,                                     # VMEM [T, H]
                         *, n_heads, kernel_size):
    b = pl.program_id(0)
    l = pl.program_id(1)
    n_layers = pl.num_programs(1)

    T, H = xs_ref.shape
    dk = H // n_heads
    length = lens_ref[b]

    # row (query/time) mask [T, 1] and additive key-column bias [1, T]
    t_row = jax.lax.broadcasted_iota(jnp.int32, (T, 1), 0)
    mask_q = (t_row < length).astype(jnp.float32)
    col_ok = jax.lax.broadcasted_iota(jnp.int32, (1, T), 1) < length
    col_bias = jnp.where(col_ok, 0.0, NEG_INF).astype(jnp.float32)

    @pl.when(l == 0)
    def _():
        # encoder entry: x * x_mask (embedding lookup/scale done in wrapper)
        xs_ref[...] = x_ref[...] * mask_q

    x = xs_ref[...]                                                  # [T, H] f32

    # -------------- masked multi-head self-attention + res + LN ------------ #
    x_bf = x.astype(MXU_DTYPE)
    qkv = jnp.dot(x_bf, wqkv_ref[l].astype(MXU_DTYPE),
                  preferred_element_type=jnp.float32) + bqkv_ref[l]  # [T, 3H]

    scale = 1.0 / math.sqrt(dk)
    ctx_parts = []
    for h in range(n_heads):                                         # static unroll
        q_h = qkv[:, h * dk:(h + 1) * dk]
        k_h = qkv[:, H + h * dk:H + (h + 1) * dk]
        v_h = qkv[:, 2 * H + h * dk:2 * H + (h + 1) * dk]
        # s[q, k] = <q_h[q], k_h[k]>  (contract last dims, no transpose copy)
        s = jax.lax.dot_general(q_h.astype(MXU_DTYPE), k_h.astype(MXU_DTYPE),
                                (((1,), (1,)), ((), ())),
                                preferred_element_type=jnp.float32) * scale
        s = s + col_bias                                             # key mask
        s = s - jnp.max(s, axis=-1, keepdims=True)
        p = jnp.exp(s)
        p = p * pl.reciprocal(jnp.sum(p, axis=-1, keepdims=True), approx=True)
        ctx_parts.append(jnp.dot(p.astype(MXU_DTYPE), v_h.astype(MXU_DTYPE),
                                 preferred_element_type=jnp.float32))  # [T, dk]
    ctx = ctx_parts[0] if n_heads == 1 else jnp.concatenate(ctx_parts, axis=-1)

    y = jnp.dot(ctx.astype(MXU_DTYPE), wo_ref[l].astype(MXU_DTYPE),
                preferred_element_type=jnp.float32) + bo_ref[l]      # [T, H]
    x = _layer_norm(x + y, g1_ref[l], b1_ref[l])

    # ----------------- FFN (conv-k, relu, conv-k) + res + LN --------------- #
    def conv1d_same(inp_f32, w_ref_, b_ref_):
        # "same" zero-padded conv:  out[t] = sum_j W[j] @ inp[t + j - pad_l].
        # Taps via sublane roll (XLU) + boundary zeroing; im2col [T, K*Cin]
        # contracted in a single deep MXU matmul against [K*Cin, Cout].
        pad_l = (kernel_size - 1) // 2
        taps = []
        for j in range(kernel_size):
            sft = j - pad_l
            if sft == 0:
                taps.append(inp_f32.astype(MXU_DTYPE))
            else:
                rolled = pltpu.roll(inp_f32, shift=(-sft) % T, axis=0)
                valid = jnp.logical_and(t_row + sft >= 0, t_row + sft < T)
                taps.append(jnp.where(valid, rolled, 0.0).astype(MXU_DTYPE))
        xp = taps[0] if kernel_size == 1 else jnp.concatenate(taps, axis=-1)
        return jnp.dot(xp, w_ref_[l].astype(MXU_DTYPE),
                       preferred_element_type=jnp.float32) + b_ref_[l]

    h1 = jnp.maximum(conv1d_same(x * mask_q, fw1_ref, fb1_ref), 0.0)  # relu
    h2 = conv1d_same(h1 * mask_q, fw2_ref, fb2_ref)
    x = _layer_norm(x + h2 * mask_q, g2_ref[l], b2_ref[l])

    xs_ref[...] = x

    # ----------- last layer: exit mask + 1x1 conv projection --------------- #
    @pl.when(l == n_layers - 1)
    def _():
        xm = x * mask_q                                              # encoder exit mask
        xo_ref[...] = xm
        st = jnp.dot(xm.astype(MXU_DTYPE), pw_ref[...].astype(MXU_DTYPE),
                     preferred_element_type=jnp.float32) + pb_ref[...]
        st_ref[...] = st * mask_q                                    # lane-dense store


# ------------------------------- parameters -------------------------------- #

def make_params(key, cfg):
    n_vocab, H = cfg['n_vocab'], cfg['hidden_channels']
    Fc, out_ch = cfg['filter_channels'], cfg['out_channels']
    L, K = cfg['n_layers'], cfg['kernel_size']
    f32, bf16 = jnp.float32, jnp.bfloat16

    keys = iter(jax.random.split(key, 12))

    def nrm(shape, scale, dtype=f32):
        return (jax.random.normal(next(keys), shape, f32) * scale).astype(dtype)

    return {
        'emb': nrm((n_vocab, H), H ** -0.5),                         # nn.Embedding init
        # fused attention weights, input-major:  Wqkv [L, H, 3H], Wo [L, H, H]
        'wqkv': nrm((L, H, 3 * H), H ** -0.5, bf16),
        'bqkv': jnp.zeros((L, 1, 3 * H), f32),
        'wo': nrm((L, H, H), H ** -0.5, bf16),
        'bo': jnp.zeros((L, 1, H), f32),
        'ln1_g': jnp.ones((L, 1, H), f32), 'ln1_b': jnp.zeros((L, 1, H), f32),
        # FFN conv weights, im2col layout: tap-major rows [L, K*C_in, C_out]
        'ffn_w1': nrm((L, K * H, Fc), (H * K) ** -0.5, bf16),
        'ffn_b1': jnp.zeros((L, 1, Fc), f32),
        'ffn_w2': nrm((L, K * Fc, H), (Fc * K) ** -0.5, bf16),
        'ffn_b2': jnp.zeros((L, 1, H), f32),
        'ln2_g': jnp.ones((L, 1, H), f32), 'ln2_b': jnp.zeros((L, 1, H), f32),
        # proj Conv1d(H, 2*out, 1): input-major [H, 2*out]
        'proj_w': nrm((H, 2 * out_ch), H ** -0.5, bf16),
        'proj_b': jnp.zeros((1, 2 * out_ch), f32),
    }


# ----------------------------- forward wrapper ------------------------------ #

def text_encoder_forward(x_ids, x_lengths, params, cfg):
    H, out_ch = cfg['hidden_channels'], cfg['out_channels']
    nh, L, K = cfg['n_heads'], cfg['n_layers'], cfg['kernel_size']
    B, T = x_ids.shape
    f32 = jnp.float32
    S = 2 * out_ch
    S_pad = ((S + 127) // 128) * 128                                  # lane-dense stats

    # glue: embedding gather + sqrt(H) scale (masking done in-kernel)
    x = params['emb'][x_ids].astype(f32) * math.sqrt(H)               # [B, T, H]
    lens = x_lengths.astype(jnp.int32)                                # SMEM prefetch

    # zero-pad the 1x1 projection to a 128-multiple output width
    pw = jnp.zeros((H, S_pad), params['proj_w'].dtype).at[:, :S].set(params['proj_w'])
    pb = jnp.zeros((1, S_pad), f32).at[:, :S].set(params['proj_b'])

    def resident(a):     # full array resident in VMEM, fetched once (constant index)
        nd = a.ndim
        return pl.BlockSpec(tuple(a.shape), lambda b, l, lens_, _n=nd: (0,) * _n)

    row_spec = pl.BlockSpec((None, T, H), lambda b, l, lens_: (b, 0, 0))
    st_spec = pl.BlockSpec((None, T, S_pad), lambda b, l, lens_: (b, 0, 0))

    w = params
    weight_args = (w['wqkv'], w['bqkv'], w['wo'], w['bo'], w['ln1_g'], w['ln1_b'],
                   w['ffn_w1'], w['ffn_b1'], w['ffn_w2'], w['ffn_b2'],
                   w['ln2_g'], w['ln2_b'], pw, pb)
    weight_specs = [resident(a) for a in weight_args]

    # VMEM budget: resident weights + double-buffered x/out blocks + scratch,
    # capped below v7x's 64 MiB physical VMEM.
    resident_bytes = sum(int(a.size) * a.dtype.itemsize for a in weight_args)
    io_bytes = 2 * (2 * T * H * 4 + T * S_pad * 4)
    vmem_limit = int(min(64 << 20,
                         max(32 << 20, resident_bytes + io_bytes + (8 << 20))))

    grid_spec = pltpu.PrefetchScalarGridSpec(
        num_scalar_prefetch=1,
        grid=(B, L),
        in_specs=[row_spec] + weight_specs,
        out_specs=(row_spec, st_spec),
        scratch_shapes=[pltpu.VMEM((T, H), f32)],
    )

    x_enc, stats = pl.pallas_call(
        partial(encoder_stack_kernel, n_heads=nh, kernel_size=K),
        grid_spec=grid_spec,
        out_shape=(jax.ShapeDtypeStruct((B, T, H), f32),
                   jax.ShapeDtypeStruct((B, T, S_pad), f32)),
        compiler_params=pltpu.CompilerParams(
            dimension_semantics=("parallel", "arbitrary"),
            vmem_limit_bytes=vmem_limit),
    )(lens, x, *weight_args)

    # glue: drop lane padding, back to PyTorch NCL layout, split (m, logs)
    x_out = jnp.transpose(x_enc, (0, 2, 1))                          # [B, H, T]
    stats = jnp.transpose(stats[:, :, :S], (0, 2, 1))                # [B, 2*out, T]
    m, logs = stats[:, :out_ch, :], stats[:, out_ch:, :]
    seq_mask = (jnp.arange(T)[None, :] < x_lengths[:, None]).astype(f32)
    x_mask = seq_mask[:, None, :]                                    # [B, 1, T]
    return x_out, m, logs, x_mask


# ----------------------------------- main ----------------------------------- #

if __name__ == "__main__":
    cfg = dict(n_vocab=40, out_channels=8, hidden_channels=32,
               filter_channels=64, n_heads=2, n_layers=2,
               kernel_size=3, p_dropout=0.1)

    key = jax.random.PRNGKey(0)
    pkey, dkey = jax.random.split(key)
    params = make_params(pkey, cfg)

    B, T = 2, 16
    x_ids = jax.random.randint(dkey, (B, T), 0, cfg['n_vocab'], dtype=jnp.int32)
    x_lengths = jnp.array([16, 11], dtype=jnp.int32)

    fwd = jax.jit(partial(text_encoder_forward, cfg=cfg))
    x_out, m, logs, x_mask = fwd(x_ids, x_lengths, params)
    jax.block_until_ready((x_out, m, logs, x_mask))

    assert x_out.shape == (B, cfg['hidden_channels'], T)
    assert m.shape == (B, cfg['out_channels'], T)
    assert logs.shape == (B, cfg['out_channels'], T)
    assert x_mask.shape == (B, 1, T)
    assert bool(jnp.all(jnp.isfinite(x_out)))
    assert bool(jnp.all(jnp.isfinite(m)))
    assert bool(jnp.all(jnp.isfinite(logs)))
    print("KERNEL_OK")
</pallas_src>

<mosaic_0001>
module attributes {stable_mosaic.version = 11 : i64} {
  func.func @encoder_stack_kernel(%arg0: i32, %arg1: i32, %arg2: memref<2xi32, #tpu.memory_space<smem>>, %arg3: memref<1x16x32xf32, #tpu.memory_space<vmem>>, %arg4: memref<2x32x96xbf16, #tpu.memory_space<vmem>>, %arg5: memref<2x1x96xf32, #tpu.memory_space<vmem>>, %arg6: memref<2x32x32xbf16, #tpu.memory_space<vmem>>, %arg7: memref<2x1x32xf32, #tpu.memory_space<vmem>>, %arg8: memref<2x1x32xf32, #tpu.memory_space<vmem>>, %arg9: memref<2x1x32xf32, #tpu.memory_space<vmem>>, %arg10: memref<2x96x64xbf16, #tpu.memory_space<vmem>>, %arg11: memref<2x1x64xf32, #tpu.memory_space<vmem>>, %arg12: memref<2x192x32xbf16, #tpu.memory_space<vmem>>, %arg13: memref<2x1x32xf32, #tpu.memory_space<vmem>>, %arg14: memref<2x1x32xf32, #tpu.memory_space<vmem>>, %arg15: memref<2x1x32xf32, #tpu.memory_space<vmem>>, %arg16: memref<32x128xbf16, #tpu.memory_space<vmem>>, %arg17: memref<1x128xf32, #tpu.memory_space<vmem>>, %arg18: memref<1x16x32xf32, #tpu.memory_space<vmem>>, %arg19: memref<1x16x128xf32, #tpu.memory_space<vmem>>, %arg20: memref<16x32xf32, #tpu.memory_space<vmem>>) attributes {dimension_semantics = [#tpu.dimension_semantics<parallel>, #tpu.dimension_semantics<arbitrary>], iteration_bounds = array<i64: 2, 2>, scalar_prefetch = 1 : i64, scratch_operands = 1 : i64, tpu.core_type = #tpu.core_type<tc>, window_params = [{transform_indices = @transform_0, window_bounds = array<i64: 1, 16, 32>}, {pipeline_mode = #tpu.pipeline_mode<synchronous>, transform_indices = @transform_1, window_bounds = array<i64: 2, 32, 96>}, {pipeline_mode = #tpu.pipeline_mode<synchronous>, transform_indices = @transform_2, window_bounds = array<i64: 2, 1, 96>}, {pipeline_mode = #tpu.pipeline_mode<synchronous>, transform_indices = @transform_3, window_bounds = array<i64: 2, 32, 32>}, {pipeline_mode = #tpu.pipeline_mode<synchronous>, transform_indices = @transform_4, window_bounds = array<i64: 2, 1, 32>}, {pipeline_mode = #tpu.pipeline_mode<synchronous>, transform_indices = @transform_5, window_bounds = array<i64: 2, 1, 32>}, {pipeline_mode = #tpu.pipeline_mode<synchronous>, transform_indices = @transform_6, window_bounds = array<i64: 2, 1, 32>}, {pipeline_mode = #tpu.pipeline_mode<synchronous>, transform_indices = @transform_7, window_bounds = array<i64: 2, 96, 64>}, {pipeline_mode = #tpu.pipeline_mode<synchronous>, transform_indices = @transform_8, window_bounds = array<i64: 2, 1, 64>}, {pipeline_mode = #tpu.pipeline_mode<synchronous>, transform_indices = @transform_9, window_bounds = array<i64: 2, 192, 32>}, {pipeline_mode = #tpu.pipeline_mode<synchronous>, transform_indices = @transform_10, window_bounds = array<i64: 2, 1, 32>}, {pipeline_mode = #tpu.pipeline_mode<synchronous>, transform_indices = @transform_11, window_bounds = array<i64: 2, 1, 32>}, {pipeline_mode = #tpu.pipeline_mode<synchronous>, transform_indices = @transform_12, window_bounds = array<i64: 2, 1, 32>}, {pipeline_mode = #tpu.pipeline_mode<synchronous>, transform_indices = @transform_13, window_bounds = array<i64: 32, 128>}, {pipeline_mode = #tpu.pipeline_mode<synchronous>, transform_indices = @transform_14, window_bounds = array<i64: 1, 128>}, {transform_indices = @transform_15, window_bounds = array<i64: 1, 16, 32>}, {transform_indices = @transform_16, window_bounds = array<i64: 1, 16, 128>}]} {
    %0 = arith.index_cast %arg0 : i32 to index
    %1 = memref.load %arg2[%0] : memref<2xi32, #tpu.memory_space<smem>>
    %2 = tpu.iota {dimensions = array<i32: 0>} : vector<16x1xi32>
    %3 = vector.broadcast %1 : i32 to vector<16x1xi32>
    %4 = arith.cmpi slt, %2, %3 : vector<16x1xi32>
    %5 = arith.extui %4 : vector<16x1xi1> to vector<16x1xi32>
    %6 = arith.sitofp %5 : vector<16x1xi32> to vector<16x1xf32>
    %7 = tpu.iota {dimensions = array<i32: 1>} : vector<1x16xi32>
    %8 = vector.broadcast %1 : i32 to vector<1x16xi32>
    %9 = arith.cmpi slt, %7, %8 : vector<1x16xi32>
    %cst = arith.constant 0.000000e+00 : f32
    %cst_0 = arith.constant -1.000000e+04 : f32
    %10 = vector.broadcast %cst : f32 to vector<1x16xf32>
    %11 = vector.broadcast %cst_0 : f32 to vector<1x16xf32>
    %12 = arith.select %9, %10, %11 : vector<1x16xi1>, vector<1x16xf32>
    %c0_i32 = arith.constant 0 : i32
    %13 = arith.cmpi eq, %arg1, %c0_i32 : i32
    %14 = arith.extui %13 : i1 to i32
    %c0_i32_1 = arith.constant 0 : i32
    %15 = arith.cmpi ne, %14, %c0_i32_1 : i32
    scf.if %15 {
      %c0_76 = arith.constant 0 : index
      %c0_77 = arith.constant 0 : index
      %c0_78 = arith.constant 0 : index
      %236 = vector.load %arg3[%c0_76, %c0_77, %c0_78] : memref<1x16x32xf32, #tpu.memory_space<vmem>>, vector<1x16x32xf32>
      %237 = vector.shape_cast %236 : vector<1x16x32xf32> to vector<16x32xf32>
      %238 = vector.broadcast %6 : vector<16x1xf32> to vector<16x32xf32>
      %239 = arith.mulf %237, %238 : vector<16x32xf32>
      %c0_79 = arith.constant 0 : index
      %c0_80 = arith.constant 0 : index
      %240 = vector.load %arg20[%c0_79, %c0_80] : memref<16x32xf32, #tpu.memory_space<vmem>>, vector<16x32xf32>
      tpu.vector_store %arg20[%c0_79, %c0_80], %239 {strides = array<i32>} : memref<16x32xf32, #tpu.memory_space<vmem>>, vector<16x32xf32>,
    } else {
    }
    %c0 = arith.constant 0 : index
    %c0_2 = arith.constant 0 : index
    %16 = vector.load %arg20[%c0, %c0_2] : memref<16x32xf32, #tpu.memory_space<vmem>>, vector<16x32xf32>
    %17 = arith.truncf %16 : vector<16x32xf32> to vector<16x32xbf16>
    %18 = arith.index_cast %arg1 : i32 to index
    %c0_3 = arith.constant 0 : index
    %c0_4 = arith.constant 0 : index
    %19 = vector.load %arg4[%18, %c0_3, %c0_4] : memref<2x32x96xbf16, #tpu.memory_space<vmem>>, vector<1x32x96xbf16>
    %20 = vector.shape_cast %19 : vector<1x32x96xbf16> to vector<32x96xbf16>
    %cst_5 = arith.constant dense<0.000000e+00> : vector<16x96xf32>
    %21 = tpu.matmul %17, %20, %cst_5 {dimension_numbers = #tpu.dot_dimension_numbers<[1], [0], [0], [1], [0, 0, 1, 1], [], []>} : vector<16x32xbf16>, vector<32x96xbf16>, vector<16x96xf32> -> vector<16x96xf32>
    %22 = arith.index_cast %arg1 : i32 to index
    %c0_6 = arith.constant 0 : index
    %c0_7 = arith.constant 0 : index
    %23 = vector.load %arg5[%22, %c0_6, %c0_7] : memref<2x1x96xf32, #tpu.memory_space<vmem>>, vector<1x1x96xf32>
    %24 = vector.shape_cast %23 : vector<1x1x96xf32> to vector<1x96xf32>
    %25 = vector.broadcast %24 : vector<1x96xf32> to vector<16x96xf32>
    %26 = arith.addf %21, %25 : vector<16x96xf32>
    %27 = vector.extract_strided_slice %26 {offsets = [0, 0], sizes = [16, 16], strides = [1, 1]} : vector<16x96xf32> to vector<16x16xf32>
    %28 = vector.extract_strided_slice %26 {offsets = [0, 32], sizes = [16, 16], strides = [1, 1]} : vector<16x96xf32> to vector<16x16xf32>
    %29 = vector.extract_strided_slice %26 {offsets = [0, 64], sizes = [16, 16], strides = [1, 1]} : vector<16x96xf32> to vector<16x16xf32>
    %30 = arith.truncf %27 : vector<16x16xf32> to vector<16x16xbf16>
    %31 = arith.truncf %28 : vector<16x16xf32> to vector<16x16xbf16>
    %cst_8 = arith.constant dense<0.000000e+00> : vector<16x16xf32>
    %32 = tpu.matmul %30, %31, %cst_8 {dimension_numbers = #tpu.dot_dimension_numbers<[1], [1], [0], [0], [0, 0, 1, 0], [], []>} : vector<16x16xbf16>, vector<16x16xbf16>, vector<16x16xf32> -> vector<16x16xf32>
    %cst_9 = arith.constant 2.500000e-01 : f32
    %33 = vector.broadcast %cst_9 : f32 to vector<16x16xf32>
    %34 = arith.mulf %32, %33 : vector<16x16xf32>
    %35 = vector.broadcast %12 : vector<1x16xf32> to vector<16x16xf32>
    %36 = arith.addf %34, %35 : vector<16x16xf32>
    %cst_10 = arith.constant dense<0xFF800000> : vector<16xf32>
    %37 = vector.multi_reduction <maximumf>, %36, %cst_10 [1] : vector<16x16xf32> to vector<16xf32>
    %38 = vector.shape_cast %37 : vector<16xf32> to vector<16x1xf32>
    %39 = vector.broadcast %38 : vector<16x1xf32> to vector<16x16xf32>
    %40 = arith.subf %36, %39 : vector<16x16xf32>
    %41 = math.exp %40 : vector<16x16xf32>
    %cst_11 = arith.constant dense<0.000000e+00> : vector<16xf32>
    %42 = vector.multi_reduction <add>, %41, %cst_11 [1] : vector<16x16xf32> to vector<16xf32>
    %43 = vector.shape_cast %42 : vector<16xf32> to vector<16x1xf32>
    %44 = tpu.reciprocal %43 {approx = true} : vector<16x1xf32> -> vector<16x1xf32>
    %45 = vector.broadcast %44 : vector<16x1xf32> to vector<16x16xf32>
    %46 = arith.mulf %41, %45 : vector<16x16xf32>
    %47 = arith.truncf %46 : vector<16x16xf32> to vector<16x16xbf16>
    %48 = arith.truncf %29 : vector<16x16xf32> to vector<16x16xbf16>
    %cst_12 = arith.constant dense<0.000000e+00> : vector<16x16xf32>
    %49 = tpu.matmul %47, %48, %cst_12 {dimension_numbers = #tpu.dot_dimension_numbers<[1], [0], [0], [1], [0, 0, 1, 1], [], []>} : vector<16x16xbf16>, vector<16x16xbf16>, vector<16x16xf32> -> vector<16x16xf32>
    %50 = vector.extract_strided_slice %26 {offsets = [0, 16], sizes = [16, 16], strides = [1, 1]} : vector<16x96xf32> to vector<16x16xf32>
    %51 = vector.extract_strided_slice %26 {offsets = [0, 48], sizes = [16, 16], strides = [1, 1]} : vector<16x96xf32> to vector<16x16xf32>
    %52 = vector.extract_strided_slice %26 {offsets = [0, 80], sizes = [16, 16], strides = [1, 1]} : vector<16x96xf32> to vector<16x16xf32>
    %53 = arith.truncf %50 : vector<16x16xf32> to vector<16x16xbf16>
    %54 = arith.truncf %51 : vector<16x16xf32> to vector<16x16xbf16>
    %cst_13 = arith.constant dense<0.000000e+00> : vector<16x16xf32>
    %55 = tpu.matmul %53, %54, %cst_13 {dimension_numbers = #tpu.dot_dimension_numbers<[1], [1], [0], [0], [0, 0, 1, 0], [], []>} : vector<16x16xbf16>, vector<16x16xbf16>, vector<16x16xf32> -> vector<16x16xf32>
    %cst_14 = arith.constant 2.500000e-01 : f32
    %56 = vector.broadcast %cst_14 : f32 to vector<16x16xf32>
    %57 = arith.mulf %55, %56 : vector<16x16xf32>
    %58 = vector.broadcast %12 : vector<1x16xf32> to vector<16x16xf32>
    %59 = arith.addf %57, %58 : vector<16x16xf32>
    %cst_15 = arith.constant dense<0xFF800000> : vector<16xf32>
    %60 = vector.multi_reduction <maximumf>, %59, %cst_15 [1] : vector<16x16xf32> to vector<16xf32>
    %61 = vector.shape_cast %60 : vector<16xf32> to vector<16x1xf32>
    %62 = vector.broadcast %61 : vector<16x1xf32> to vector<16x16xf32>
    %63 = arith.subf %59, %62 : vector<16x16xf32>
    %64 = math.exp %63 : vector<16x16xf32>
    %cst_16 = arith.constant dense<0.000000e+00> : vector<16xf32>
    %65 = vector.multi_reduction <add>, %64, %cst_16 [1] : vector<16x16xf32> to vector<16xf32>
    %66 = vector.shape_cast %65 : vector<16xf32> to vector<16x1xf32>
    %67 = tpu.reciprocal %66 {approx = true} : vector<16x1xf32> -> vector<16x1xf32>
    %68 = vector.broadcast %67 : vector<16x1xf32> to vector<16x16xf32>
    %69 = arith.mulf %64, %68 : vector<16x16xf32>
    %70 = arith.truncf %69 : vector<16x16xf32> to vector<16x16xbf16>
    %71 = arith.truncf %52 : vector<16x16xf32> to vector<16x16xbf16>
    %cst_17 = arith.constant dense<0.000000e+00> : vector<16x16xf32>
    %72 = tpu.matmul %70, %71, %cst_17 {dimension_numbers = #tpu.dot_dimension_numbers<[1], [0], [0], [1], [0, 0, 1, 1], [], []>} : vector<16x16xbf16>, vector<16x16xbf16>, vector<16x16xf32> -> vector<16x16xf32>
    %73 = tpu.concatenate %49, %72 in 1 : vector<16x16xf32>, vector<16x16xf32> -> vector<16x32xf32>
    %74 = arith.truncf %73 : vector<16x32xf32> to vector<16x32xbf16>
    %75 = arith.index_cast %arg1 : i32 to index
    %c0_18 = arith.constant 0 : index
    %c0_19 = arith.constant 0 : index
    %76 = vector.load %arg6[%75, %c0_18, %c0_19] : memref<2x32x32xbf16, #tpu.memory_space<vmem>>, vector<1x32x32xbf16>
    %77 = vector.shape_cast %76 : vector<1x32x32xbf16> to vector<32x32xbf16>
    %cst_20 = arith.constant dense<0.000000e+00> : vector<16x32xf32>
    %78 = tpu.matmul %74, %77, %cst_20 {dimension_numbers = #tpu.dot_dimension_numbers<[1], [0], [0], [1], [0, 0, 1, 1], [], []>} : vector<16x32xbf16>, vector<32x32xbf16>, vector<16x32xf32> -> vector<16x32xf32>
    %79 = arith.index_cast %arg1 : i32 to index
    %c0_21 = arith.constant 0 : index
    %c0_22 = arith.constant 0 : index
    %80 = vector.load %arg7[%79, %c0_21, %c0_22] : memref<2x1x32xf32, #tpu.memory_space<vmem>>, vector<1x1x32xf32>
    %81 = vector.shape_cast %80 : vector<1x1x32xf32> to vector<1x32xf32>
    %82 = vector.broadcast %81 : vector<1x32xf32> to vector<16x32xf32>
    %83 = arith.addf %78, %82 : vector<16x32xf32>
    %84 = arith.addf %16, %83 : vector<16x32xf32>
    %85 = arith.index_cast %arg1 : i32 to index
    %c0_23 = arith.constant 0 : index
    %c0_24 = arith.constant 0 : index
    %86 = vector.load %arg8[%85, %c0_23, %c0_24] : memref<2x1x32xf32, #tpu.memory_space<vmem>>, vector<1x1x32xf32>
    %87 = vector.shape_cast %86 : vector<1x1x32xf32> to vector<1x32xf32>
    %88 = arith.index_cast %arg1 : i32 to index
    %c0_25 = arith.constant 0 : index
    %c0_26 = arith.constant 0 : index
    %89 = vector.load %arg9[%88, %c0_25, %c0_26] : memref<2x1x32xf32, #tpu.memory_space<vmem>>, vector<1x1x32xf32>
    %90 = vector.shape_cast %89 : vector<1x1x32xf32> to vector<1x32xf32>
    %cst_27 = arith.constant dense<0.000000e+00> : vector<16xf32>
    %91 = vector.multi_reduction <add>, %84, %cst_27 [1] : vector<16x32xf32> to vector<16xf32>
    %92 = vector.shape_cast %91 : vector<16xf32> to vector<16x1xf32>
    %cst_28 = arith.constant 3.200000e+01 : f32
    %93 = vector.broadcast %cst_28 : f32 to vector<16x1xf32>
    %94 = arith.divf %92, %93 : vector<16x1xf32>
    %95 = vector.broadcast %94 : vector<16x1xf32> to vector<16x32xf32>
    %96 = arith.subf %84, %95 : vector<16x32xf32>
    %97 = arith.mulf %96, %96 : vector<16x32xf32>
    %cst_29 = arith.constant dense<0.000000e+00> : vector<16xf32>
    %98 = vector.multi_reduction <add>, %97, %cst_29 [1] : vector<16x32xf32> to vector<16xf32>
    %99 = vector.shape_cast %98 : vector<16xf32> to vector<16x1xf32>
    %cst_30 = arith.constant 3.200000e+01 : f32
    %100 = vector.broadcast %cst_30 : f32 to vector<16x1xf32>
    %101 = arith.divf %99, %100 : vector<16x1xf32>
    %102 = vector.broadcast %94 : vector<16x1xf32> to vector<16x32xf32>
    %103 = arith.subf %84, %102 : vector<16x32xf32>
    %cst_31 = arith.constant 9.99999974E-6 : f32
    %104 = vector.broadcast %cst_31 : f32 to vector<16x1xf32>
    %105 = arith.addf %101, %104 : vector<16x1xf32>
    %106 = math.rsqrt %105 : vector<16x1xf32>
    %107 = vector.broadcast %106 : vector<16x1xf32> to vector<16x32xf32>
    %108 = arith.mulf %103, %107 : vector<16x32xf32>
    %109 = vector.broadcast %87 : vector<1x32xf32> to vector<16x32xf32>
    %110 = arith.mulf %108, %109 : vector<16x32xf32>
    %111 = vector.broadcast %90 : vector<1x32xf32> to vector<16x32xf32>
    %112 = arith.addf %110, %111 : vector<16x32xf32>
    %113 = vector.broadcast %6 : vector<16x1xf32> to vector<16x32xf32>
    %114 = arith.mulf %112, %113 : vector<16x32xf32>
    %c1_i32 = arith.constant 1 : i32
    %115 = tpu.dynamic_rotate %114 by %c1_i32 dim 0 : vector<16x32xf32>, i32 -> vector<16x32xf32>
    %c-1_i32 = arith.constant -1 : i32
    %116 = vector.broadcast %c-1_i32 : i32 to vector<16x1xi32>
    %117 = arith.addi %2, %116 : vector<16x1xi32>
    %c0_i32_32 = arith.constant 0 : i32
    %118 = vector.broadcast %c0_i32_32 : i32 to vector<16x1xi32>
    %119 = arith.cmpi sge, %117, %118 : vector<16x1xi32>
    %c-1_i32_33 = arith.constant -1 : i32
    %120 = vector.broadcast %c-1_i32_33 : i32 to vector<16x1xi32>
    %121 = arith.addi %2, %120 : vector<16x1xi32>
    %c16_i32 = arith.constant 16 : i32
    %122 = vector.broadcast %c16_i32 : i32 to vector<16x1xi32>
    %123 = arith.cmpi slt, %121, %122 : vector<16x1xi32>
    %124 = arith.andi %119, %123 : vector<16x1xi1>
    %cst_34 = arith.constant 0.000000e+00 : f32
    %125 = vector.shape_cast %124 : vector<16x1xi1> to vector<16x1xi1>
    %126 = vector.broadcast %125 : vector<16x1xi1> to vector<16x32xi1>
    %127 = vector.broadcast %cst_34 : f32 to vector<16x32xf32>
    %128 = arith.select %126, %115, %127 : vector<16x32xi1>, vector<16x32xf32>
    %129 = arith.truncf %128 : vector<16x32xf32> to vector<16x32xbf16>
    %130 = arith.truncf %114 : vector<16x32xf32> to vector<16x32xbf16>
    %c15_i32 = arith.constant 15 : i32
    %131 = tpu.dynamic_rotate %114 by %c15_i32 dim 0 : vector<16x32xf32>, i32 -> vector<16x32xf32>
    %c1_i32_35 = arith.constant 1 : i32
    %132 = vector.broadcast %c1_i32_35 : i32 to vector<16x1xi32>
    %133 = arith.addi %2, %132 : vector<16x1xi32>
    %c0_i32_36 = arith.constant 0 : i32
    %134 = vector.broadcast %c0_i32_36 : i32 to vector<16x1xi32>
    %135 = arith.cmpi sge, %133, %134 : vector<16x1xi32>
    %c1_i32_37 = arith.constant 1 : i32
    %136 = vector.broadcast %c1_i32_37 : i32 to vector<16x1xi32>
    %137 = arith.addi %2, %136 : vector<16x1xi32>
    %c16_i32_38 = arith.constant 16 : i32
    %138 = vector.broadcast %c16_i32_38 : i32 to vector<16x1xi32>
    %139 = arith.cmpi slt, %137, %138 : vector<16x1xi32>
    %140 = arith.andi %135, %139 : vector<16x1xi1>
    %cst_39 = arith.constant 0.000000e+00 : f32
    %141 = vector.shape_cast %140 : vector<16x1xi1> to vector<16x1xi1>
    %142 = vector.broadcast %141 : vector<16x1xi1> to vector<16x32xi1>
    %143 = vector.broadcast %cst_39 : f32 to vector<16x32xf32>
    %144 = arith.select %142, %131, %143 : vector<16x32xi1>, vector<16x32xf32>
    %145 = arith.truncf %144 : vector<16x32xf32> to vector<16x32xbf16>
    %146 = tpu.concatenate %129, %130, %145 in 1 : vector<16x32xbf16>, vector<16x32xbf16>, vector<16x32xbf16> -> vector<16x96xbf16>
    %147 = arith.index_cast %arg1 : i32 to index
    %c0_40 = arith.constant 0 : index
    %c0_41 = arith.constant 0 : index
    %148 = vector.load %arg10[%147, %c0_40, %c0_41] : memref<2x96x64xbf16, #tpu.memory_space<vmem>>, vector<1x96x64xbf16>
    %149 = vector.shape_cast %148 : vector<1x96x64xbf16> to vector<96x64xbf16>
    %cst_42 = arith.constant dense<0.000000e+00> : vector<16x64xf32>
    %150 = tpu.matmul %146, %149, %cst_42 {dimension_numbers = #tpu.dot_dimension_numbers<[1], [0], [0], [1], [0, 0, 1, 1], [], []>} : vector<16x96xbf16>, vector<96x64xbf16>, vector<16x64xf32> -> vector<16x64xf32>
    %151 = arith.index_cast %arg1 : i32 to index
    %c0_43 = arith.constant 0 : index
    %c0_44 = arith.constant 0 : index
    %152 = vector.load %arg11[%151, %c0_43, %c0_44] : memref<2x1x64xf32, #tpu.memory_space<vmem>>, vector<1x1x64xf32>
    %153 = vector.shape_cast %152 : vector<1x1x64xf32> to vector<1x64xf32>
    %154 = vector.broadcast %153 : vector<1x64xf32> to vector<16x64xf32>
    %155 = arith.addf %150, %154 : vector<16x64xf32>
    %cst_45 = arith.constant 0.000000e+00 : f32
    %156 = vector.broadcast %cst_45 : f32 to vector<16x64xf32>
    %157 = arith.maximumf %155, %156 : vector<16x64xf32>
    %158 = vector.broadcast %6 : vector<16x1xf32> to vector<16x64xf32>
    %159 = arith.mulf %157, %158 : vector<16x64xf32>
    %c1_i32_46 = arith.constant 1 : i32
    %160 = tpu.dynamic_rotate %159 by %c1_i32_46 dim 0 : vector<16x64xf32>, i32 -> vector<16x64xf32>
    %c-1_i32_47 = arith.constant -1 : i32
    %161 = vector.broadcast %c-1_i32_47 : i32 to vector<16x1xi32>
    %162 = arith.addi %2, %161 : vector<16x1xi32>
    %c0_i32_48 = arith.constant 0 : i32
    %163 = vector.broadcast %c0_i32_48 : i32 to vector<16x1xi32>
    %164 = arith.cmpi sge, %162, %163 : vector<16x1xi32>
    %c-1_i32_49 = arith.constant -1 : i32
    %165 = vector.broadcast %c-1_i32_49 : i32 to vector<16x1xi32>
    %166 = arith.addi %2, %165 : vector<16x1xi32>
    %c16_i32_50 = arith.constant 16 : i32
    %167 = vector.broadcast %c16_i32_50 : i32 to vector<16x1xi32>
    %168 = arith.cmpi slt, %166, %167 : vector<16x1xi32>
    %169 = arith.andi %164, %168 : vector<16x1xi1>
    %cst_51 = arith.constant 0.000000e+00 : f32
    %170 = vector.shape_cast %169 : vector<16x1xi1> to vector<16x1xi1>
    %171 = vector.broadcast %170 : vector<16x1xi1> to vector<16x64xi1>
    %172 = vector.broadcast %cst_51 : f32 to vector<16x64xf32>
    %173 = arith.select %171, %160, %172 : vector<16x64xi1>, vector<16x64xf32>
    %174 = arith.truncf %173 : vector<16x64xf32> to vector<16x64xbf16>
    %175 = arith.truncf %159 : vector<16x64xf32> to vector<16x64xbf16>
    %c15_i32_52 = arith.constant 15 : i32
    %176 = tpu.dynamic_rotate %159 by %c15_i32_52 dim 0 : vector<16x64xf32>, i32 -> vector<16x64xf32>
    %c1_i32_53 = arith.constant 1 : i32
    %177 = vector.broadcast %c1_i32_53 : i32 to vector<16x1xi32>
    %178 = arith.addi %2, %177 : vector<16x1xi32>
    %c0_i32_54 = arith.constant 0 : i32
    %179 = vector.broadcast %c0_i32_54 : i32 to vector<16x1xi32>
    %180 = arith.cmpi sge, %178, %179 : vector<16x1xi32>
    %c1_i32_55 = arith.constant 1 : i32
    %181 = vector.broadcast %c1_i32_55 : i32 to vector<16x1xi32>
    %182 = arith.addi %2, %181 : vector<16x1xi32>
    %c16_i32_56 = arith.constant 16 : i32
    %183 = vector.broadcast %c16_i32_56 : i32 to vector<16x1xi32>
    %184 = arith.cmpi slt, %182, %183 : vector<16x1xi32>
    %185 = arith.andi %180, %184 : vector<16x1xi1>
    %cst_57 = arith.constant 0.000000e+00 : f32
    %186 = vector.shape_cast %185 : vector<16x1xi1> to vector<16x1xi1>
    %187 = vector.broadcast %186 : vector<16x1xi1> to vector<16x64xi1>
    %188 = vector.broadcast %cst_57 : f32 to vector<16x64xf32>
    %189 = arith.select %187, %176, %188 : vector<16x64xi1>, vector<16x64xf32>
    %190 = arith.truncf %189 : vector<16x64xf32> to vector<16x64xbf16>
    %191 = tpu.concatenate %174, %175, %190 in 1 : vector<16x64xbf16>, vector<16x64xbf16>, vector<16x64xbf16> -> vector<16x192xbf16>
    %192 = arith.index_cast %arg1 : i32 to index
    %c0_58 = arith.constant 0 : index
    %c0_59 = arith.constant 0 : index
    %193 = vector.load %arg12[%192, %c0_58, %c0_59] : memref<2x192x32xbf16, #tpu.memory_space<vmem>>, vector<1x192x32xbf16>
    %194 = vector.shape_cast %193 : vector<1x192x32xbf16> to vector<192x32xbf16>
    %cst_60 = arith.constant dense<0.000000e+00> : vector<16x32xf32>
    %195 = tpu.matmul %191, %194, %cst_60 {dimension_numbers = #tpu.dot_dimension_numbers<[1], [0], [0], [1], [0, 0, 1, 1], [], []>} : vector<16x192xbf16>, vector<192x32xbf16>, vector<16x32xf32> -> vector<16x32xf32>
    %196 = arith.index_cast %arg1 : i32 to index
    %c0_61 = arith.constant 0 : index
    %c0_62 = arith.constant 0 : index
    %197 = vector.load %arg13[%196, %c0_61, %c0_62] : memref<2x1x32xf32, #tpu.memory_space<vmem>>, vector<1x1x32xf32>
    %198 = vector.shape_cast %197 : vector<1x1x32xf32> to vector<1x32xf32>
    %199 = vector.broadcast %198 : vector<1x32xf32> to vector<16x32xf32>
    %200 = arith.addf %195, %199 : vector<16x32xf32>
    %201 = vector.broadcast %6 : vector<16x1xf32> to vector<16x32xf32>
    %202 = arith.mulf %200, %201 : vector<16x32xf32>
    %203 = arith.addf %112, %202 : vector<16x32xf32>
    %204 = arith.index_cast %arg1 : i32 to index
    %c0_63 = arith.constant 0 : index
    %c0_64 = arith.constant 0 : index
    %205 = vector.load %arg14[%204, %c0_63, %c0_64] : memref<2x1x32xf32, #tpu.memory_space<vmem>>, vector<1x1x32xf32>
    %206 = vector.shape_cast %205 : vector<1x1x32xf32> to vector<1x32xf32>
    %207 = arith.index_cast %arg1 : i32 to index
    %c0_65 = arith.constant 0 : index
    %c0_66 = arith.constant 0 : index
    %208 = vector.load %arg15[%207, %c0_65, %c0_66] : memref<2x1x32xf32, #tpu.memory_space<vmem>>, vector<1x1x32xf32>
    %209 = vector.shape_cast %208 : vector<1x1x32xf32> to vector<1x32xf32>
    %cst_67 = arith.constant dense<0.000000e+00> : vector<16xf32>
    %210 = vector.multi_reduction <add>, %203, %cst_67 [1] : vector<16x32xf32> to vector<16xf32>
    %211 = vector.shape_cast %210 : vector<16xf32> to vector<16x1xf32>
    %cst_68 = arith.constant 3.200000e+01 : f32
    %212 = vector.broadcast %cst_68 : f32 to vector<16x1xf32>
    %213 = arith.divf %211, %212 : vector<16x1xf32>
    %214 = vector.broadcast %213 : vector<16x1xf32> to vector<16x32xf32>
    %215 = arith.subf %203, %214 : vector<16x32xf32>
    %216 = arith.mulf %215, %215 : vector<16x32xf32>
    %cst_69 = arith.constant dense<0.000000e+00> : vector<16xf32>
    %217 = vector.multi_reduction <add>, %216, %cst_69 [1] : vector<16x32xf32> to vector<16xf32>
    %218 = vector.shape_cast %217 : vector<16xf32> to vector<16x1xf32>
    %cst_70 = arith.constant 3.200000e+01 : f32
    %219 = vector.broadcast %cst_70 : f32 to vector<16x1xf32>
    %220 = arith.divf %218, %219 : vector<16x1xf32>
    %221 = vector.broadcast %213 : vector<16x1xf32> to vector<16x32xf32>
    %222 = arith.subf %203, %221 : vector<16x32xf32>
    %cst_71 = arith.constant 9.99999974E-6 : f32
    %223 = vector.broadcast %cst_71 : f32 to vector<16x1xf32>
    %224 = arith.addf %220, %223 : vector<16x1xf32>
    %225 = math.rsqrt %224 : vector<16x1xf32>
    %226 = vector.broadcast %225 : vector<16x1xf32> to vector<16x32xf32>
    %227 = arith.mulf %222, %226 : vector<16x32xf32>
    %228 = vector.broadcast %206 : vector<1x32xf32> to vector<16x32xf32>
    %229 = arith.mulf %227, %228 : vector<16x32xf32>
    %230 = vector.broadcast %209 : vector<1x32xf32> to vector<16x32xf32>
    %231 = arith.addf %229, %230 : vector<16x32xf32>
    %c0_72 = arith.constant 0 : index
    %c0_73 = arith.constant 0 : index
    %232 = vector.load %arg20[%c0_72, %c0_73] : memref<16x32xf32, #tpu.memory_space<vmem>>, vector<16x32xf32>
    tpu.vector_store %arg20[%c0_72, %c0_73], %231 {strides = array<i32>} : memref<16x32xf32, #tpu.memory_space<vmem>>, vector<16x32xf32>,
    %c1_i32_74 = arith.constant 1 : i32
    %233 = arith.cmpi eq, %arg1, %c1_i32_74 : i32
    %234 = arith.extui %233 : i1 to i32
    %c0_i32_75 = arith.constant 0 : i32
    %235 = arith.cmpi ne, %234, %c0_i32_75 : i32
    scf.if %235 {
      %236 = vector.broadcast %6 : vector<16x1xf32> to vector<16x32xf32>
      %237 = arith.mulf %231, %236 : vector<16x32xf32>
      %c0_76 = arith.constant 0 : index
      %c0_77 = arith.constant 0 : index
      %c0_78 = arith.constant 0 : index
      %238 = vector.load %arg18[%c0_76, %c0_77, %c0_78] : memref<1x16x32xf32, #tpu.memory_space<vmem>>, vector<1x16x32xf32>
      %239 = vector.shape_cast %238 : vector<1x16x32xf32> to vector<16x32xf32>
      %240 = vector.shape_cast %237 : vector<16x32xf32> to vector<1x16x32xf32>
      tpu.vector_store %arg18[%c0_76, %c0_77, %c0_78], %240 {strides = array<i32>} : memref<1x16x32xf32, #tpu.memory_space<vmem>>, vector<1x16x32xf32>,
      %241 = arith.truncf %237 : vector<16x32xf32> to vector<16x32xbf16>
      %c0_79 = arith.constant 0 : index
      %c0_80 = arith.constant 0 : index
      %242 = vector.load %arg16[%c0_79, %c0_80] : memref<32x128xbf16, #tpu.memory_space<vmem>>, vector<32x128xbf16>
      %cst_81 = arith.constant dense<0.000000e+00> : vector<16x128xf32>
      %243 = tpu.matmul %241, %242, %cst_81 {dimension_numbers = #tpu.dot_dimension_numbers<[1], [0], [0], [1], [0, 0, 1, 1], [], []>} : vector<16x32xbf16>, vector<32x128xbf16>, vector<16x128xf32> -> vector<16x128xf32>
      %c0_82 = arith.constant 0 : index
      %c0_83 = arith.constant 0 : index
      %244 = vector.load %arg17[%c0_82, %c0_83] : memref<1x128xf32, #tpu.memory_space<vmem>>, vector<1x128xf32>
      %245 = vector.broadcast %244 : vector<1x128xf32> to vector<16x128xf32>
      %246 = arith.addf %243, %245 : vector<16x128xf32>
      %247 = vector.broadcast %6 : vector<16x1xf32> to vector<16x128xf32>
      %248 = arith.mulf %246, %247 : vector<16x128xf32>
      %c0_84 = arith.constant 0 : index
      %c0_85 = arith.constant 0 : index
      %c0_86 = arith.constant 0 : index
      %249 = vector.load %arg19[%c0_84, %c0_85, %c0_86] : memref<1x16x128xf32, #tpu.memory_space<vmem>>, vector<1x16x128xf32>
      %250 = vector.shape_cast %249 : vector<1x16x128xf32> to vector<16x128xf32>
      %251 = vector.shape_cast %248 : vector<16x128xf32> to vector<1x16x128xf32>
      tpu.vector_store %arg19[%c0_84, %c0_85, %c0_86], %251 {strides = array<i32>} : memref<1x16x128xf32, #tpu.memory_space<vmem>>, vector<1x16x128xf32>,
    } else {
    }
    return
  }
  func.func @transform_0(%arg0: i32, %arg1: i32, %arg2: memref<2xi32, #tpu.memory_space<smem>>) -> (i32, i32, i32) {
    %c0_i32 = arith.constant 0 : i32
    %c0_i32_0 = arith.constant 0 : i32
    %c0_i32_1 = arith.constant 0 : i32
    return %arg0, %c0_i32, %c0_i32_0 : i32, i32, i32
  }
  func.func @transform_1(%arg0: i32, %arg1: i32, %arg2: memref<2xi32, #tpu.memory_space<smem>>) -> (i32, i32, i32) {
    %c0_i32 = arith.constant 0 : i32
    %c0_i32_0 = arith.constant 0 : i32
    %c0_i32_1 = arith.constant 0 : i32
    %c0_i32_2 = arith.constant 0 : i32
    return %c0_i32, %c0_i32_0, %c0_i32_1 : i32, i32, i32
  }
  func.func @transform_2(%arg0: i32, %arg1: i32, %arg2: memref<2xi32, #tpu.memory_space<smem>>) -> (i32, i32, i32) {
    %c0_i32 = arith.constant 0 : i32
    %c0_i32_0 = arith.constant 0 : i32
    %c0_i32_1 = arith.constant 0 : i32
    %c0_i32_2 = arith.constant 0 : i32
    return %c0_i32, %c0_i32_0, %c0_i32_1 : i32, i32, i32
  }
  func.func @transform_3(%arg0: i32, %arg1: i32, %arg2: memref<2xi32, #tpu.memory_space<smem>>) -> (i32, i32, i32) {
    %c0_i32 = arith.constant 0 : i32
    %c0_i32_0 = arith.constant 0 : i32
    %c0_i32_1 = arith.constant 0 : i32
    %c0_i32_2 = arith.constant 0 : i32
    return %c0_i32, %c0_i32_0, %c0_i32_1 : i32, i32, i32
  }
  func.func @transform_4(%arg0: i32, %arg1: i32, %arg2: memref<2xi32, #tpu.memory_space<smem>>) -> (i32, i32, i32) {
    %c0_i32 = arith.constant 0 : i32
    %c0_i32_0 = arith.constant 0 : i32
    %c0_i32_1 = arith.constant 0 : i32
    %c0_i32_2 = arith.constant 0 : i32
    return %c0_i32, %c0_i32_0, %c0_i32_1 : i32, i32, i32
  }
  func.func @transform_5(%arg0: i32, %arg1: i32, %arg2: memref<2xi32, #tpu.memory_space<smem>>) -> (i32, i32, i32) {
    %c0_i32 = arith.constant 0 : i32
    %c0_i32_0 = arith.constant 0 : i32
    %c0_i32_1 = arith.constant 0 : i32
    %c0_i32_2 = arith.constant 0 : i32
    return %c0_i32, %c0_i32_0, %c0_i32_1 : i32, i32, i32
  }
  func.func @transform_6(%arg0: i32, %arg1: i32, %arg2: memref<2xi32, #tpu.memory_space<smem>>) -> (i32, i32, i32) {
    %c0_i32 = arith.constant 0 : i32
    %c0_i32_0 = arith.constant 0 : i32
    %c0_i32_1 = arith.constant 0 : i32
    %c0_i32_2 = arith.constant 0 : i32
    return %c0_i32, %c0_i32_0, %c0_i32_1 : i32, i32, i32
  }
  func.func @transform_7(%arg0: i32, %arg1: i32, %arg2: memref<2xi32, #tpu.memory_space<smem>>) -> (i32, i32, i32) {
    %c0_i32 = arith.constant 0 : i32
    %c0_i32_0 = arith.constant 0 : i32
    %c0_i32_1 = arith.constant 0 : i32
    %c0_i32_2 = arith.constant 0 : i32
    return %c0_i32, %c0_i32_0, %c0_i32_1 : i32, i32, i32
  }
  func.func @transform_8(%arg0: i32, %arg1: i32, %arg2: memref<2xi32, #tpu.memory_space<smem>>) -> (i32, i32, i32) {
    %c0_i32 = arith.constant 0 : i32
    %c0_i32_0 = arith.constant 0 : i32
    %c0_i32_1 = arith.constant 0 : i32
    %c0_i32_2 = arith.constant 0 : i32
    return %c0_i32, %c0_i32_0, %c0_i32_1 : i32, i32, i32
  }
  func.func @transform_9(%arg0: i32, %arg1: i32, %arg2: memref<2xi32, #tpu.memory_space<smem>>) -> (i32, i32, i32) {
    %c0_i32 = arith.constant 0 : i32
    %c0_i32_0 = arith.constant 0 : i32
    %c0_i32_1 = arith.constant 0 : i32
    %c0_i32_2 = arith.constant 0 : i32
    return %c0_i32, %c0_i32_0, %c0_i32_1 : i32, i32, i32
  }
  func.func @transform_10(%arg0: i32, %arg1: i32, %arg2: memref<2xi32, #tpu.memory_space<smem>>) -> (i32, i32, i32) {
    %c0_i32 = arith.constant 0 : i32
    %c0_i32_0 = arith.constant 0 : i32
    %c0_i32_1 = arith.constant 0 : i32
    %c0_i32_2 = arith.constant 0 : i32
    return %c0_i32, %c0_i32_0, %c0_i32_1 : i32, i32, i32
  }
  func.func @transform_11(%arg0: i32, %arg1: i32, %arg2: memref<2xi32, #tpu.memory_space<smem>>) -> (i32, i32, i32) {
    %c0_i32 = arith.constant 0 : i32
    %c0_i32_0 = arith.constant 0 : i32
    %c0_i32_1 = arith.constant 0 : i32
    %c0_i32_2 = arith.constant 0 : i32
    return %c0_i32, %c0_i32_0, %c0_i32_1 : i32, i32, i32
  }
  func.func @transform_12(%arg0: i32, %arg1: i32, %arg2: memref<2xi32, #tpu.memory_space<smem>>) -> (i32, i32, i32) {
    %c0_i32 = arith.constant 0 : i32
    %c0_i32_0 = arith.constant 0 : i32
    %c0_i32_1 = arith.constant 0 : i32
    %c0_i32_2 = arith.constant 0 : i32
    return %c0_i32, %c0_i32_0, %c0_i32_1 : i32, i32, i32
  }
  func.func @transform_13(%arg0: i32, %arg1: i32, %arg2: memref<2xi32, #tpu.memory_space<smem>>) -> (i32, i32) {
    %c0_i32 = arith.constant 0 : i32
    %c0_i32_0 = arith.constant 0 : i32
    %c0_i32_1 = arith.constant 0 : i32
    return %c0_i32, %c0_i32_0 : i32, i32
  }
  func.func @transform_14(%arg0: i32, %arg1: i32, %arg2: memref<2xi32, #tpu.memory_space<smem>>) -> (i32, i32) {
    %c0_i32 = arith.constant 0 : i32
    %c0_i32_0 = arith.constant 0 : i32
    %c0_i32_1 = arith.constant 0 : i32
    return %c0_i32, %c0_i32_0 : i32, i32
  }
  func.func @transform_15(%arg0: i32, %arg1: i32, %arg2: memref<2xi32, #tpu.memory_space<smem>>) -> (i32, i32, i32) {
    %c0_i32 = arith.constant 0 : i32
    %c0_i32_0 = arith.constant 0 : i32
    %c0_i32_1 = arith.constant 0 : i32
    return %arg0, %c0_i32, %c0_i32_0 : i32, i32, i32
  }
  func.func @transform_16(%arg0: i32, %arg1: i32, %arg2: memref<2xi32, #tpu.memory_space<smem>>) -> (i32, i32, i32) {
    %c0_i32 = arith.constant 0 : i32
    %c0_i32_0 = arith.constant 0 : i32
    %c0_i32_1 = arith.constant 0 : i32
    return %arg0, %c0_i32, %c0_i32_0 : i32, i32, i32
  }
}

</mosaic_0001>

<bundles_post_ra>
// kernel: text_encoder_forward.1
= control target key start
LH: loop header
LB: loop body
LE: loop exit
PB: predicated region body
PF: predicated region fallthrough
CT: control target
= control target key end

     0   :  { %s2547_s0 = inlined_call_operand.vmem [shape: s32[2], index: 0, kind: input, shape index: {}]   ;;  %s2548_s1 = inlined_call_operand.vmem [shape: f32[2,16,32], index: 1, kind: input, shape index: {}]   ;;  %s2549_s2 = inlined_call_operand.vmem [shape: bf16[2,32,96], index: 2, kind: input, shape index: {}]   ;;  %s2550_s3 = inlined_call_operand.vmem [shape: f32[2,1,96], index: 3, kind: input, shape index: {}]   ;;  %s2551_s4 = inlined_call_operand.vmem [shape: bf16[2,32,32], index: 4, kind: input, shape index: {}]   ;;  %s2552_s5 = inlined_call_operand.vmem [shape: f32[2,1,32], index: 5, kind: input, shape index: {}]   ;;  %s2553_s6 = inlined_call_operand.vmem [shape: f32[2,1,32], index: 6, kind: input, shape index: {}]   ;;  %s2554_s7 = inlined_call_operand.vmem [shape: f32[2,1,32], index: 7, kind: input, shape index: {}]   ;;  %s2555_s8 = inlined_call_operand.vmem [shape: bf16[2,96,64], index: 8, kind: input, shape index: {}]   ;;  %s2556_s9 = inlined_call_operand.vmem [shape: f32[2,1,64], index: 9, kind: input, shape index: {}]   ;;  %s2557_s10 = inlined_call_operand.vmem [shape: bf16[2,192,32], index: 10, kind: input, shape index: {}]   ;;  %s2558_s11 = inlined_call_operand.vmem [shape: f32[2,1,32], index: 11, kind: input, shape index: {}]   ;;  %s2559_s12 = inlined_call_operand.vmem [shape: f32[2,1,32], index: 12, kind: input, shape index: {}]   ;;  %s2560_s13 = inlined_call_operand.vmem [shape: f32[2,1,32], index: 13, kind: input, shape index: {}]   ;;  %s2561_s14 = inlined_call_operand.vmem [shape: bf16[32,128], index: 14, kind: input, shape index: {}]   ;;  %s2562_s15 = inlined_call_operand.vmem [shape: f32[1,128], index: 15, kind: input, shape index: {}]   ;;  %s2563_s16 = inlined_call_operand.hbm [shape: f32[2,16,32], index: 16, kind: output, shape index: {0}]   ;;  %s2564_s17 = inlined_call_operand.vmem [shape: f32[2,16,128], index: 17, kind: output, shape index: {1}]  }
   0x1   :  { %2573 = sst [smem:[#allocation18_spill]] %s2547_s0 }
   0x2   :  { %2574 = sst [smem:[#allocation19_spill]] %s2548_s1 }
   0x3   :  { %2575 = sst [smem:[#allocation20_spill]] %s2558_s11 }
   0x4   :  { %s2576_s26 = sld [smem:[#allocation18_spill]] }
   0xa   :  { %s23_s11 = sshll.u32 %s2576_s26, 4  ;;  %s24_s11 = int_to_ptr.vmem [resolvable:$true] %s23_s11 }
   0xb   :  { %s1939_s27 = scalar_lea.vmem %s24_s11, 16  ;;  %p1944_p1 = scmp.lt.s32.totalorder %s24_s11, %s24_s11 }
   0xc   :  { %p1940_p0 = scmp.ne.s32.totalorder %s24_s11, %s1939_s27  ;;  %p1945_p2 = scmp.lt.s32.totalorder %s1939_s27, %s1939_s27 }
   0xe   :  { %p1946_p3 = por %p1945_p2, %p1944_p1 }
  0x10   :  { %p1947_p4 = pnand %p1946_p3, %p1940_p0 }
  0x12   :  { %1950 = shalt.err (!%p1947_p4)  }
  0x13   :  { %s2047_s28 = smov [#allocation4]  }
  0x14   :  { %26 = dma.vmem_to_smem %s24_s11, 16, %s2047_s28, [#allocation3] }
  0x15   :  { %2009 = dma.done.wait [#allocation3], 16 }
  0x16   :  { %2010 = vsyncadd [#allocation3], 4294967280 }
  0x17   :  { %28 = sfence }
  0x18   :  { %29 = vsyncpa [#allocation6], 0 }
  0x19   :  { %31 = vsyncpa [#allocation6 + $0x1], 0  ;;  %s2157_s29 = smov 0   ;;  %s2159_s0 = smov 0  }
  0x1a   :  { %s2161_s30 = smov 0   ;;  %s2163_s18 = smov 0  }
  0x1b   :  { %s2165_s19 = smov 0   ;;  %s2167_s1 = smov 0  }
  0x1c   :  { %s2169_s20 = smov 0   ;;  %s2171_s11 = smov 0  }
  0x1d LB: > { %2577 = sst [smem:[#allocation9_spill]] %s2017_s29  ;;  %s1638_s21 = sadd.s32 4294967295, %s2045_s11   ;;  %s2045_s11 = sphi %s2171_s11, %s37_s11   ;;  %s2041_s20 = sphi %s2169_s20, %s2598_s20   ;;  %s2037_s1 = sphi %s2167_s1, %s2597_s1   ;;  %s2033_s19 = sphi %s2165_s19, %s2596_s19   ;;  %s2029_s18 = sphi %s2163_s18, %s2601_s18   ;;  %s2025_s30 = sphi %s2161_s30, %s2594_s30   ;;  %s2021_s0 = sphi %s2159_s0, %s2600_s0   ;;  %s2017_s29 = sphi %s2157_s29, %s2599_s29  }
  0x1e   : > { %2578 = sst [smem:[#allocation10_spill]] %s2025_s30  ;;  %s1639_s22 = sadd.s32 4294967294, %s2045_s11  }
  0x1f   : > { %2579 = sst [smem:[#allocation11_spill]] %s2037_s1  ;;  %s46_s23 = sadd.s32 1, %s2037_s1 }
  0x20   : > { %2580 = sst [smem:[#allocation12_spill]] %s2041_s20  ;;  %p47_p5 = scmp.ge.s32.totalorder %s46_s23, 2 }
  0x21   : > { %2581 = sst [smem:[#allocation13_spill]] %s2045_s11  ;;  %s49_s24 = sadd.s32 1, %s2041_s20 }
  0x22   : > { %p386_p6 = scmp.ne.s32.totalorder %s2025_s30, %s2021_s0  ;;  %p387_p7 = scmp.eq.s32.totalorder %s1638_s21, 3 }
  0x23   : > { %s2603_s23 = smov (%p47_p5, %s46_s23), 0  ;;  %s2605_s24 = smov (!%p47_p5, %s49_s24), %s2041_s20 }
  0x24   : > { %2582 = sst [smem:[#allocation14_spill]] %s2603_s23  ;;  %p2206_p8 = por %p387_p7, %p386_p6 }
  0x25   : > { %p392_p9 = scmp.ne.s32.totalorder %s2021_s0, %s2017_s29  ;;  %p51_p10 = scmp.ge.s32.totalorder %s2605_s24, 2 }
  0x26   : > { %p393_p11 = scmp.eq.s32.totalorder %s1639_s22, 3  ;;  %p1642_p12 = scmp.ge.s32.totalorder %s2045_s11, 1 }
  0x27   : > { %p487_p13 = scmp.lt.s32.totalorder %s2045_s11, 5  ;;  %s2607_s24 = smov (%p51_p10, %s2605_s24), 0 }
  0x28   : > { %2584 = sst [smem:[#allocation15_spill]] %s2607_s24  ;;  %p2216_p0 = por %p393_p11, %p392_p9 }
  0x29   : > { %p488_p1 = pnand %p1642_p12, %p487_p13  ;;  %s373_s27 = ssub.s32 %s2041_s20, %s2607_s24 }
  0x2a   : > { %s2585_s26 = scalar_select %p2216_p0, 1, 0 }
  0x2b   : > { %s376_s28 = sadd.s32 1, %s2025_s30  ;;  %p374_p2 = scmp.eq.s32.totalorder %s373_s27, 0 }
  0x2c   : > { %2586 = sst [smem:[#allocation16_spill]] %s2585_s26  ;;  %491 = sbr.rel (%p488_p1) target bundleno = 2938 (0xb7a), region = 80 }
  0x2d   : > { %s2224_s21 = scalar_select %p374_p2, %s2025_s30, %s376_s28  }
  0x2e   : > { %s532_s22 = sand.u32 (!%p488_p1), 1, %s2021_s0   ;;  %p542_p3 = scmp.lt.s32.totalorder (!%p488_p1), %s2033_s19, 1 }
  0x2f   : > { %2587 = sst [smem:[#allocation17_spill]] %s2224_s21  ;;  %s1643_s23 = sshll.u32 (!%p488_p1), %s532_s22, 4 }
  0x30   : > { %s553_s1 = sld [smem:[#allocation4 + %s2033_s19]] (!%p488_p1)  ;;  %p1650_p4 = scmp.ne.s32.totalorder (!%p488_p1), %s2029_s18, 0 }
  0x31   : > { %v554_v0 = vlaneseq  ;;  %s543_s26 = scalar_select %p542_p3, %s2033_s19, 1  ;;  %v2048_v5 = vmov 0.0   ;;  %v2049_v8 = vmov -10000.0  }
  0x32   : > { %s2588_s20 = sld [smem:[#allocation19_spill]] }
  0x33   : > { %v2231_v1 = vshrl.u32 %v554_v0, 7  ;;  %v565_v3 = vand.u32 127, %v554_v0  ;;  %s1704_s27 = sshll.u32 %s543_s26, 4 }
  0x34   : > { %s2243_s11 = scalar_lea.vmem %s2564_s17, %s1704_s27  ;;  %571 = sbr.rel (%p1650_p4) target bundleno = 61 (0x3d), region = 84 }
  0x35   : > { %v2235_v2 = vadd.s32 8, %v2231_v1 }
  0x36   : > { %v557_v4 = vstv %s553_s1 }
  0x37   : > { %vm558_vm0 = vcmp.lt.s32.totalorder %v2231_v1, %v557_v4  ;;  %vm559_vm1 = vcmp.lt.s32.totalorder %v2235_v2, %v557_v4  ;;  %vm566_vm2 = vcmp.lt.s32.totalorder %v565_v3, %v557_v4 }
  0x38   : > { %s546_s21 = scalar_lea.vmem %s2588_s20, %s1704_s27  ;;  %v2248_v6 = vsel %vm558_vm0, 1.0, %v2048_v5  ;;  %v2251_v7 = vsel %vm559_vm1, 1.0, %v2048_v5  ;;  %v2253_v9 = vsel %vm566_vm2, 0.0, %v2049_v8  ;;  %s2255_s20 = scalar_lea.vmem [#allocation5], %s1643_s23 }
  0x39   : > { %v572_v10 = vld [vmem:[%s546_s21] sm:$0xff]  ;;  %vm576_vm3 = vcmask 261120   ;;  %v573_v11 = vld [vmem:[%s546_s21 + $0x8] sm:$0xff] }
  0x3a   : > { %v574_v12 = vmul.f32 %v2248_v6, %v572_v10  ;;  %v575_v13 = vmul.f32 %v2251_v7, %v573_v11 }
  0x3c   : > { %577 = vst.msk [vmem:[#allocation2] sm:$0xff] %vm576_vm3, %v574_v12  ;;  %578 = vst.msk [vmem:[#allocation2 + $0x8] sm:$0xff] %vm576_vm3, %v575_v13 }
  0x3d PF: > { %1735 = vmatprep.subr.bf16.mxu0 %v2048_v5  ;;  %s1706_s29 = sshll.u32 %s2029_s18, 4  ;;  %1755 = vmatprep.subr.bf16.mxu1 %v2048_v5  ;;  %vm2050_vm4 = vmmov 0   ;;  %vm609_vm5 = vcmask 261120   ;;  %s2051_s30 = smov 112   ;;  %vm658_vm6 = vcmask 130048   ;;  %vm1060_vm7 = vcmp.lt.s32.totalorder %v2231_v1, 7 }
  0x3e   : > { %s584_s23 = scalar_lea.vmem %s2549_s2, %s1706_s29  ;;  %1739 = vmatprep.mubr.msk.bf16.mxu0 %vm2050_vm4, %v2048_v5  ;;  %1757 = vmatprep.mubr.msk.bf16.mxu1 %vm2050_vm4, %v2048_v5  ;;  %s2277_s21 = scalar_lea.vmem %s2551_s4, %s1706_s29  ;;  %vm1039_vm9 = vcmp.lt.s32.totalorder %v2231_v1, 1  ;;  %vm1087_vm11 = vcmask 523264   ;;  %vm1149_vm12 = vcmask 785408  }
  0x3f   : > { %v1891_v14 = vld [vmem:[%s584_s23 + $0x8] sm:$0xff]   ;;  %v1892_v17 = vld [vmem:[%s584_s23] sm:$0xff]   ;;  %s589_s29 = scalar_lea.vmem %s2550_s3, %s2029_s18  ;;  %s2052_s1 = smov 96  }
  0x40   : > { %1736 = vmatpush3.bf16.msra.mxu0 %v1891_v14  ;;  %v1653_v20 = vld [vmem:[%s589_s29] ss:$0 sm:$0xff]  ;;  %s2053_s23 = smov 80   ;;  %s2054_s24 = smov 48  }
  0x41   : > { %1737 = vmatprep.subr.bf16.mxu0 %v2048_v5  ;;  %s2055_s26 = smov 64   ;;  %s2056_s27 = smov 16  }
  0x42   : > { %s922_s29 = scalar_lea.vmem %s2552_s5, %s2029_s18  ;;  %s988_s28 = scalar_lea.vmem %s2553_s6, %s2029_s18 }
  0x43   : > { %v2270_v15 = vld [vmem:[#allocation2] sm:$0xff]  ;;  %v2272_v16 = vld [vmem:[#allocation2 + $0x8] sm:$0xff]  ;;  %p1694_p5 = scmp.ne.s32.totalorder %s2029_s18, 1 }
  0x44   : > { %v581_v18 = vpack.c.bf16 %v2272_v16, %v2270_v15  ;;  %1738 = vmatpush3.bf16.msra.mxu0 %v1892_v17 }
  0x45   : > { %1743 = vmatprep.subr.bf16.mxu0 %v2048_v5 }
  0x47   : > { %1740 = vmatmul.mubr.msk.bf16.vlgmr.msra.gmra.mxu0 %vm609_vm5, %v581_v18 }
  0x48   : > { %1745 = vmatprep.mubr.msk.bf16.mxu0 %vm2050_vm4, %v2048_v5 }
 0x107   : > { %v647_v19 = vpop.f32.mrf.mxu0 }
 0x108   : > { %v648_v23 = vadd.f32 %v1653_v20, %v647_v19 }
 0x109   : > { %v1741_v21 = vpop.f32.mrf.mxu0 }
 0x10b   : > { %v650_v22 = vpop.f32.mrf.mxu0 }
 0x10c   : > { %v651_v24 = vadd.f32 %v1653_v20, %v650_v22 }
 0x10d   : > { %v1742_v25 = vpop.f32.mrf.mxu0 }
 0x10e   : > { %v2290_v26 = vpack.c.bf16 %v651_v24, %v648_v23 }
 0x110   : > { %780 = vrot.lane.b32.xlu1 %v2290_v26, %s2051_s30  ;;  %656 = vrot.lane.b32.xlu0 %v2290_v26, %s2052_s1  ;;  %s1708_s30 = smul.u32 48, %s2029_s18  ;;  %s990_s1 = scalar_lea.vmem %s2554_s7, %s2029_s18 }
 0x114   : > { %782 = vrot.lane.b32.xlu0 %v2290_v26, %s2053_s23  ;;  %s2057_s23 = smov 32  }
 0x182   : > { %v657_v27 = vpop.permute.xlu0 %656  ;;  %v781_v31 = vpop.permute.xlu1 %780 }
 0x183   : > { %v663_v28 = vsel %vm658_vm6, %v657_v27, 0 }
 0x184   : > { %1744 = vmatpush3.bf16.xpose.msra.mxu0 %v663_v28 }
 0x185   : > { %1749 = vmatprep.subr.bf16.mxu0 %v2048_v5 }
 0x186   : > { %v783_v29 = vpop.permute.xlu0 %782 }
 0x187   : > { %v788_v30 = vsel %vm658_vm6, %v783_v29, 0 }
 0x188   : > { %1756 = vmatpush3.bf16.xpose.msra.mxu1 %v788_v30 }
 0x189   : > { %1767 = vmatprep.subr.bf16.mxu1 %v2048_v5 }
 0x18b   : > { %1746 = vmatmul.mubr.msk.bf16.vlgmr.msra.gmra.mxu0 %vm658_vm6, %v2290_v26 }
 0x18c   : > { %1751 = vmatprep.mubr.msk.bf16.mxu0 %vm2050_vm4, %v2048_v5 }
 0x18f   : > { %1758 = vmatmul.mubr.msk.bf16.vlgmr.msra.gmra.mxu1 %vm658_vm6, %v781_v31  ;;  %v1893_v31 = vld [vmem:[%s2277_s21 + $0x8] sm:$0xff]  }
 0x190   : > { %1771 = vmatprep.mubr.msk.bf16.mxu1 %vm2050_vm4, %v2048_v5  ;;  %1768 = vmatpush3.bf16.msra.mxu1 %v1893_v31  ;;  %v2375_v31 = vadd.s32 1, %v2235_v2 }
 0x191   : > { %1769 = vmatprep.subr.bf16.mxu1 %v2048_v5 }
 0x192   : > { %vm1068_vm8 = vcmp.lt.s32.totalorder %v2375_v31, 16 }
 0x24b   : > { %v699_v32 = vpop.f32.mrf.mxu0 }
 0x24c   : > { %v706_v33 = vmul.f32 0.25, %v699_v32 }
 0x24d   : > { %v1747_v34 = vpop.f32.mrf.mxu0 }
 0x24e   : > { %v708_v35 = vadd.f32 %v706_v33, %v2253_v9  ;;  %v1894_v34 = vld [vmem:[%s2277_s21] sm:$0xff]  }
 0x24f   : > { %v702_v36 = vpop.f32.mrf.mxu0  ;;  %v824_v37 = vpop.f32.mrf.mxu1  ;;  %1770 = vmatpush3.bf16.msra.mxu1 %v1894_v34 }
 0x250   : > { %v707_v38 = vmul.f32 0.25, %v702_v36  ;;  %v831_v39 = vmul.f32 0.25, %v824_v37  ;;  %v710_v40 = vsel %vm658_vm6, %v708_v35, -inf }
 0x251   : > { %v1759_v41 = vpop.f32.mrf.mxu1  ;;  %711 = vmax.xlane.f32.xlu1 %v710_v40  ;;  %v1748_v42 = vpop.f32.mrf.mxu0 }
 0x252   : > { %v709_v43 = vadd.f32 %v707_v38, %v2253_v9  ;;  %v833_v45 = vadd.f32 %v831_v39, %v2253_v9 }
 0x253   : > { %v827_v44 = vpop.f32.mrf.mxu1 }
 0x254   : > { %v832_v46 = vmul.f32 0.25, %v827_v44  ;;  %v713_v47 = vsel %vm658_vm6, %v709_v43, -inf  ;;  %v835_v51 = vsel %vm658_vm6, %v833_v45, -inf }
 0x255   : > { %v1760_v48 = vpop.f32.mrf.mxu1  ;;  %714 = vmax.xlane.f32.xlu0 %v713_v47 }
 0x256   : > { %v834_v49 = vadd.f32 %v832_v46, %v2253_v9  ;;  %v1662_v48 = vld [vmem:[%s922_s29] ss:$0 sm:$0xff]  ;;  %s1374_s29 = scalar_lea.vmem %s2559_s12, %s2029_s18 }
 0x258   : > { %v838_v50 = vsel %vm658_vm6, %v834_v49, -inf }
 0x259   : > { %839 = vmax.xlane.f32.xlu1 %v838_v50  ;;  %836 = vmax.xlane.f32.xlu0 %v835_v51 }
 0x2da   : > { %v712_v52 = vpop.xlane.xlu1 %711 }
 0x2db   : > { %v716_v53 = vsub.f32 %v708_v35, %v712_v52 }
 0x2dd   : > { %v718_v54 = vmul.f32 1.442695, %v716_v53 }
 0x2de   : > { %v715_v55 = vpop.xlane.xlu0 %714 }
 0x2df   : > { %1913 = vpow2.f32 %v718_v54  ;;  %v717_v56 = vsub.f32 %v709_v43, %v715_v55 }
 0x2e1   : > { %v720_v57 = vmul.f32 1.442695, %v717_v56 }
 0x2e2   : > { %v840_v58 = vpop.xlane.xlu1 %839  ;;  %v837_v59 = vpop.xlane.xlu0 %836 }
 0x2e3   : > { %1915 = vpow2.f32 %v720_v57  ;;  %v842_v60 = vsub.f32 %v834_v49, %v840_v58  ;;  %v841_v61 = vsub.f32 %v833_v45, %v837_v59 }
 0x2e5   : > { %v845_v62 = vmul.f32 1.442695, %v842_v60  ;;  %v843_v63 = vmul.f32 1.442695, %v841_v61 }
 0x2e7   : > { %1917 = vpow2.f32 %v845_v62 }
 0x2e8   : > { %1919 = vpow2.f32 %v843_v63 }
 0x2ec   : > { %v1914_v0 = vpop.eup %1913 }
 0x2ed   : > { %v722_v3 = vsel %vm658_vm6, %v1914_v0, 0.0 }
 0x2ee   : > { %723 = vadd.xlane.f32.xlu0 %v722_v3 }
 0x2f0   : > { %v1916_v4 = vpop.eup %1915 }
 0x2f1   : > { %v725_v8 = vsel %vm658_vm6, %v1916_v4, 0.0 }
 0x2f2   : > { %726 = vadd.xlane.f32.xlu1 %v725_v8 }
 0x2f4   : > { %v1918_v9 = vpop.eup %1917 }
 0x2f5   : > { %v1920_v10 = vpop.eup %1919  ;;  %v850_v11 = vsel %vm658_vm6, %v1918_v9, 0.0 }
 0x2f6   : > { %851 = vadd.xlane.f32.xlu1 %v850_v11  ;;  %v847_v12 = vsel %vm658_vm6, %v1920_v10, 0.0 }
 0x2f7   : > { %848 = vadd.xlane.f32.xlu0 %v847_v12 }
 0x307   : > { %858 = vrot.lane.b32.xlu1 %v2290_v26, %s2054_s24  ;;  %s2349_s24 = scalar_lea.vmem %s2555_s8, %s1708_s30 }
 0x308   : > { %v1898_v11 = vld [vmem:[%s2349_s24 + $0x10] sm:$0xff]   ;;  %v1899_v12 = vld [vmem:[%s2349_s24 + $0x8] sm:$0xff]  }
 0x30d   : > { %733 = vrot.lane.b32.xlu0 %v2290_v26, %s2055_s26 }
 0x377   : > { %v724_v13 = vpop.xlane.xlu0 %723 }
 0x378   : > { %1921 = vrcp.f32 %v724_v13 }
 0x37b   : > { %v727_v14 = vpop.xlane.xlu1 %726 }
 0x37c   : > { %1923 = vrcp.f32 %v727_v14 }
 0x37f   : > { %v852_v17 = vpop.xlane.xlu1 %851 }
 0x380   : > { %1925 = vrcp.f32 %v852_v17  ;;  %v849_v18 = vpop.xlane.xlu0 %848 }
 0x381   : > { %1927 = vrcp.f32 %v849_v18 }
 0x383   : > { %v859_v27 = vpop.permute.xlu1 %858 }
 0x384   : > { %v734_v19 = vpop.permute.xlu0 %733 }
 0x385   : > { %1750 = vmatpush3.bf16.msra.mxu0 %v734_v19  ;;  %v1922_v20 = vpop.eup %1921 }
 0x386   : > { %1761 = vmatprep.subr.bf16.mxu0 %v2048_v5  ;;  %v730_v22 = vmul.f32 %v1922_v20, %v1914_v0 }
 0x389   : > { %v1924_v21 = vpop.eup %1923 }
 0x38a   : > { %v731_v23 = vmul.f32 %v1924_v21, %v1916_v4 }
 0x38c   : > { %v732_v24 = vpack.c.bf16 %v731_v23, %v730_v22  ;;  %v1666_v22 = vld [vmem:[%s988_s28] ss:$0 sm:$0xff] }
 0x38d   : > { %v1926_v25 = vpop.eup %1925 }
 0x38e   : > { %v1928_v26 = vpop.eup %1927  ;;  %1752 = vmatmul.mubr.msk.bf16.vlgmr.msra.gmra.mxu0 %vm658_vm6, %v732_v24  ;;  %v856_v29 = vmul.f32 %v1926_v25, %v1918_v9  ;;  %v1896_v9 = vld [vmem:[%s2349_s24 + $0x20] sm:$0xff]  }
 0x38f   : > { %1762 = vmatpush3.bf16.msra.mxu0 %v859_v27  ;;  %1763 = vmatprep.mubr.msk.bf16.mxu0 %vm2050_vm4, %v2048_v5  ;;  %v855_v28 = vmul.f32 %v1928_v26, %v1920_v10  ;;  %v1897_v10 = vld [vmem:[%s2349_s24 + $0x18] sm:$0xff]   ;;  %v1900_v24 = vld [vmem:[%s2349_s24] sm:$0xff]  }
 0x390   : > { %1775 = vmatprep.subr.bf16.mxu0 %v2048_v5 }
 0x391   : > { %v857_v30 = vpack.c.bf16 %v856_v29, %v855_v28 }
 0x396   : > { %1764 = vmatmul.mubr.msk.bf16.vlgmr.msra.gmra.mxu0 %vm658_vm6, %v857_v30 }
 0x397   : > { %1787 = vmatprep.mubr.msk.bf16.mxu0 %vm2050_vm4, %v2048_v5 }
 0x44e   : > { %v773_v32 = vpop.f32.mrf.mxu0 }
 0x450   : > { %v1753_v33 = vpop.f32.mrf.mxu0 }
 0x452   : > { %v776_v35 = vpop.f32.mrf.mxu0 }
 0x454   : > { %v1754_v36 = vpop.f32.mrf.mxu0 }
 0x456   : > { %v898_v37 = vpop.f32.mrf.mxu0 }
 0x458   : > { %v1765_v38 = vpop.f32.mrf.mxu0 }
 0x45a   : > { %v901_v39 = vpop.f32.mrf.mxu0 }
 0x45b   : > { %v1886_v40 = vpack.i.bf16 %v901_v39, %v898_v37 }
 0x45c   : > { %v1766_v41 = vpop.f32.mrf.mxu0 }
 0x45d   : > { %1887 = vrot.lane.b32.xlu1 %v1886_v40, %s2056_s27 }
 0x4cf   : > { %v1888_v42 = vpop.permute.xlu1 %1887 }
 0x4d0   : > { %v1890_v43 = vunpack.i.h.bf16 %v1888_v42  ;;  %v1889_v44 = vunpack.i.l.bf16 %v1888_v42 }
 0x4d2   : > { %v914_v45 = vsel %vm658_vm6, %v776_v35, %v1890_v43  ;;  %v913_v46 = vsel %vm658_vm6, %v773_v32, %v1889_v44  ;;  %v2378_v32 = vadd.s32 4294967295, %v2231_v1 }
 0x4d3   : > { %v915_v47 = vpack.c.bf16 %v914_v45, %v913_v46 }
 0x4d4   : > { %vm1044_vm10 = vcmp.ge.s32.totalorder %v2378_v32, 0 }
 0x4d5   : > { %1772 = vmatmul.mubr.msk.bf16.vlgmr.msra.gmra.mxu1 %vm609_vm5, %v915_v47 }
 0x595   : > { %v979_v49 = vpop.f32.mrf.mxu1 }
 0x596   : > { %v980_v50 = vadd.f32 %v1662_v48, %v979_v49 }
 0x597   : > { %v1773_v51 = vpop.f32.mrf.mxu1 }
 0x598   : > { %v986_v52 = vadd.f32 %v980_v50, %v2270_v15  ;;  %v2058_v51 = vmov 0  }
 0x599   : > { %v982_v53 = vpop.f32.mrf.mxu1  ;;  %1329 = vmatprep.subr.bf16.mxu1 %v2058_v51 }
 0x59a   : > { %v983_v54 = vadd.f32 %v1662_v48, %v982_v53  ;;  %v992_v55 = vsel %vm609_vm5, %v986_v52, 0.0 }
 0x59b   : > { %993 = vadd.xlane.f32.xlu0 %v992_v55  ;;  %v1774_v56 = vpop.f32.mrf.mxu1 }
 0x59c   : > { %v987_v57 = vadd.f32 %v983_v54, %v2272_v16  ;;  %v1895_v16 = vld [vmem:[%s2349_s24 + $0x28] sm:$0xff]   ;;  %s1709_s24 = smul.u32 96, %s2029_s18 }
 0x59d   : > { %1776 = vmatpush3.bf16.msra.mxu0 %v1895_v16 }
 0x59e   : > { %v995_v58 = vsel %vm609_vm5, %v987_v57, 0.0  ;;  %1777 = vmatprep.subr.bf16.mxu0 %v2048_v5  ;;  %s2407_s28 = scalar_lea.vmem %s2557_s10, %s1709_s24  ;;  %s2589_s24 = sld [smem:[#allocation20_spill]] }
 0x59f   : > { %996 = vadd.xlane.f32.xlu1 %v995_v58  ;;  %v1902_v53 = vld [vmem:[%s2407_s28 + $0x30] sm:$0xff]   ;;  %v1903_v54 = vld [vmem:[%s2407_s28 + $0x28] sm:$0xff]   ;;  %v1904_v55 = vld [vmem:[%s2407_s28 + $0x20] sm:$0xff]  }
 0x5a0   : > { %v1905_v56 = vld [vmem:[%s2407_s28 + $0x18] sm:$0xff]   ;;  %v1907_v58 = vld [vmem:[%s2407_s28 + $0x8] sm:$0xff]  }
 0x5a1   : > { %1778 = vmatpush3.bf16.msra.mxu0 %v1896_v9 }
 0x5a2   : > { %1779 = vmatprep.subr.bf16.mxu0 %v2048_v5 }
 0x5a4   : > { %s1246_s27 = scalar_lea.vmem %s2589_s24, %s2029_s18 }
 0x5a5   : > { %1780 = vmatpush3.bf16.msra.mxu0 %v1897_v10  ;;  %v1678_v1 = vld [vmem:[%s1246_s27] ss:$0 sm:$0xff] }
 0x5a6   : > { %1781 = vmatprep.subr.bf16.mxu0 %v2048_v5 }
 0x5a9   : > { %1782 = vmatpush3.bf16.msra.mxu0 %v1898_v11 }
 0x5aa   : > { %1783 = vmatprep.subr.bf16.mxu0 %v2048_v5 }
 0x5ad   : > { %1784 = vmatpush3.bf16.msra.mxu0 %v1899_v12 }
 0x5ae   : > { %1785 = vmatprep.subr.bf16.mxu0 %v2048_v5  ;;  %v1667_v5 = vld [vmem:[%s990_s1] ss:$0 sm:$0xff]  ;;  %s1105_s1 = scalar_lea.vmem %s2556_s9, %s2029_s18 }
 0x5b1   : > { %1786 = vmatpush3.bf16.msra.mxu0 %v1900_v24 }
 0x624   : > { %v994_v59 = vpop.xlane.xlu0 %993 }
 0x625   : > { %v999_v60 = vmul.f32 0.03125, %v994_v59  ;;  %v1908_v59 = vld [vmem:[%s2407_s28] sm:$0xff]  }
 0x627   : > { %v1001_v61 = vsub.f32 %v986_v52, %v999_v60  ;;  %v1901_v52 = vld [vmem:[%s2407_s28 + $0x38] sm:$0xff]  }
 0x628   : > { %v997_v62 = vpop.xlane.xlu1 %996  ;;  %1330 = vmatpush1.bf16.msra.mxu1 %v1901_v52  ;;  %v1909_v60 = vld [vmem:[%s2407_s28 + $0x58] sm:$0xff]  }
 0x629   : > { %v1000_v63 = vmul.f32 0.03125, %v997_v62  ;;  %v1003_v0 = vmul.f32 %v1001_v61, %v1001_v61  ;;  %1331 = vmatprep.subr.bf16.mxu1 %v2058_v51  ;;  %v1911_v62 = vld [vmem:[%s2407_s28 + $0x48] sm:$0xff]  }
 0x62b   : > { %v1002_v3 = vsub.f32 %v987_v57, %v1000_v63  ;;  %v1005_v15 = vsel %vm609_vm5, %v1003_v0, 0.0  ;;  %v1906_v57 = vld [vmem:[%s2407_s28 + $0x10] sm:$0xff]   ;;  %v1912_v63 = vld [vmem:[%s2407_s28 + $0x40] sm:$0xff]  }
 0x62c   : > { %1006 = vadd.xlane.f32.xlu0 %v1005_v15  ;;  %1332 = vmatpush1.bf16.msra.mxu1 %v1902_v53  ;;  %v1669_v0 = vld [vmem:[%s1105_s1] ss:$0 sm:$0xff] }
 0x62d   : > { %v1004_v4 = vmul.f32 %v1002_v3, %v1002_v3  ;;  %1333 = vmatprep.subr.bf16.mxu1 %v2058_v51 }
 0x62f   : > { %v1008_v8 = vsel %vm609_vm5, %v1004_v4, 0.0 }
 0x630   : > { %1009 = vadd.xlane.f32.xlu0 %v1008_v8  ;;  %1334 = vmatpush1.bf16.msra.mxu1 %v1903_v54 }
 0x631   : > { %1335 = vmatprep.subr.bf16.mxu1 %v2058_v51 }
 0x634   : > { %1336 = vmatpush1.bf16.msra.mxu1 %v1904_v55 }
 0x635   : > { %1337 = vmatprep.subr.bf16.mxu1 %v2058_v51 }
 0x638   : > { %1338 = vmatpush1.bf16.msra.mxu1 %v1905_v56 }
 0x639   : > { %1339 = vmatprep.subr.bf16.mxu1 %v2058_v51 }
 0x63c   : > { %1340 = vmatpush1.bf16.msra.mxu1 %v1906_v57 }
 0x63d   : > { %1341 = vmatprep.subr.bf16.mxu1 %v2058_v51 }
 0x640   : > { %1342 = vmatpush1.bf16.msra.mxu1 %v1907_v58  ;;  %v1692_v58 = vld [vmem:[%s1374_s29] ss:$0 sm:$0xff] }
 0x641   : > { %1343 = vmatprep.subr.bf16.mxu1 %v2058_v51 }
 0x644   : > { %1344 = vmatpush1.bf16.msra.mxu1 %v1908_v59 }
 0x645   : > { %1353 = vmatprep.subr.bf16.mxu1 %v2058_v51 }
 0x648   : > { %1354 = vmatpush2.bf16.msra.mxu1 %v1909_v60 }
 0x649   : > { %1355 = vmatprep.subr.bf16.mxu1 %v2058_v51 }
 0x6b5   : > { %v1007_v13 = vpop.xlane.xlu0 %1006 }
 0x6b6   : > { %v1011_v14 = vmul.f32 0.03125, %v1007_v13 }
 0x6b8   : > { %v1013_v17 = vadd.f32 1e-05, %v1011_v14 }
 0x6b9   : > { %v1010_v18 = vpop.xlane.xlu0 %1009 }
 0x6ba   : > { %1929 = vrsqrt.f32 %v1013_v17  ;;  %v1012_v19 = vmul.f32 0.03125, %v1010_v18 }
 0x6bc   : > { %v1014_v20 = vadd.f32 1e-05, %v1012_v19 }
 0x6be   : > { %1931 = vrsqrt.f32 %v1014_v20 }
 0x6c7   : > { %v1930_v21 = vpop.eup %1929 }
 0x6c8   : > { %v1017_v23 = vmul.f32 %v1930_v21, %v1001_v61  ;;  %v1910_v61 = vld [vmem:[%s2407_s28 + $0x50] sm:$0xff]  }
 0x6c9   : > { %1356 = vmatpush2.bf16.msra.mxu1 %v1910_v61 }
 0x6ca   : > { %v1025_v25 = vmul.f32 %v1666_v22, %v1017_v23  ;;  %1357 = vmatprep.subr.bf16.mxu1 %v2058_v51 }
 0x6cb   : > { %v1932_v26 = vpop.eup %1931 }
 0x6cc   : > { %v1018_v27 = vmul.f32 %v1932_v26, %v1002_v3  ;;  %v2370_v28 = vadd.f32 %v1667_v5, %v1025_v25 }
 0x6cd   : > { %1358 = vmatpush2.bf16.msra.mxu1 %v1911_v62 }
 0x6ce   : > { %v1026_v29 = vmul.f32 %v1666_v22, %v1018_v27  ;;  %v1035_v30 = vmul.f32 %v2248_v6, %v2370_v28  ;;  %1359 = vmatprep.subr.bf16.mxu1 %v2058_v51 }
 0x6d0   : > { %v2380_v33 = vadd.f32 %v1667_v5, %v1026_v29  ;;  %v1058_v35 = vrot.slane %v1035_v30, 1  ;;  %v1037_v37 = vrot.slane %v1035_v30, 7 }
 0x6d1   : > { %1360 = vmatpush2.bf16.msra.mxu1 %v1912_v63 }
 0x6d2   : > { %v1036_v34 = vmul.f32 %v2251_v7, %v2380_v33 }
 0x6d4   : > { %v1057_v36 = vpack.c.bf16 %v1036_v34, %v1035_v30  ;;  %v1059_v2 = vrot.slane %v1036_v34, 1  ;;  %v1038_v38 = vrot.slane %v1036_v34, 7 }
 0x6d6   : > { %1079 = vrot.lane.b32.xlu1 %v1057_v36, %s2057_s23  ;;  %v1061_v39 = vsel %vm1060_vm7, %v1058_v35, %v1059_v2  ;;  %v1062_v40 = vsel %vm1060_vm7, %v1059_v2, %v1058_v35  ;;  %v1040_v41 = vsel %vm1039_vm9, %v1037_v37, %v1038_v38  ;;  %v1041_v42 = vsel %vm1039_vm9, %v1038_v38, %v1037_v37 }
 0x6d7   : > { %v1076_v43 = vsel %vm1068_vm8, %v1062_v40, 0.0  ;;  %v1054_v44 = vsel %vm1044_vm10, %v1041_v42, 0.0 }
 0x6d8   : > { %v1077_v45 = vpack.c.bf16 %v1076_v43, %v1061_v39  ;;  %v1056_v46 = vpack.c.bf16 %v1040_v41, %v1054_v44 }
 0x6da   : > { %1082 = vrot.lane.b32.xlu0 %v1077_v45, %s2055_s26 }
 0x748   : > { %v1080_v47 = vpop.permute.xlu1 %1079 }
 0x749   : > { %v1086_v48 = vsel %vm609_vm5, %v1056_v46, %v1080_v47 }
 0x74c   : > { %v1083_v49 = vpop.permute.xlu0 %1082 }
 0x74d   : > { %v1089_v50 = vsel %vm1087_vm11, %v1086_v48, %v1083_v49 }
 0x74e   : > { %1788 = vmatmul.mubr.msk.bf16.vlgmr.msra.gmra.mxu0 %vm1149_vm12, %v1089_v50 }
 0x80e   : > { %v1186_v3 = vpop.f32.mrf.mxu0 }
 0x80f   : > { %v1187_v15 = vadd.f32 %v1669_v0, %v1186_v3 }
 0x810   : > { %v1789_v4 = vpop.f32.mrf.mxu0 }
 0x811   : > { %v1193_v8 = vmax.f32 %v1187_v15, 0.0 }
 0x812   : > { %v1189_v16 = vpop.f32.mrf.mxu0 }
 0x813   : > { %v1190_v9 = vadd.f32 %v1669_v0, %v1189_v16  ;;  %v1195_v10 = vmul.f32 %v2248_v6, %v1193_v8 }
 0x814   : > { %v1790_v11 = vpop.f32.mrf.mxu0 }
 0x815   : > { %v1194_v12 = vmax.f32 %v1190_v9, 0.0  ;;  %v1197_v14 = vrot.slane %v1195_v10, 7  ;;  %v1205_v17 = vrot.slane %v1195_v10, 1 }
 0x817   : > { %v1196_v13 = vmul.f32 %v2251_v7, %v1194_v12 }
 0x819   : > { %v1198_v18 = vrot.slane %v1196_v13, 7  ;;  %v1206_v19 = vrot.slane %v1196_v13, 1  ;;  %v1204_v20 = vpack.c.bf16 %v1196_v13, %v1195_v10 }
 0x81b   : > { %1213 = vrot.lane.b32.xlu1 %v1204_v20, %s2055_s26  ;;  %v1207_v21 = vsel %vm1060_vm7, %v1205_v17, %v1206_v19  ;;  %v1208_v22 = vsel %vm1060_vm7, %v1206_v19, %v1205_v17  ;;  %v1199_v23 = vsel %vm1039_vm9, %v1197_v14, %v1198_v18  ;;  %v1200_v5 = vsel %vm1039_vm9, %v1198_v18, %v1197_v14  ;;  %s1376_s26 = scalar_lea.vmem %s2560_s13, %s2029_s18 }
 0x81c   : > { %v1210_v24 = vsel %vm1068_vm8, %v1208_v22, 0.0  ;;  %v1201_v25 = vsel %vm1044_vm10, %v1200_v5, 0.0  ;;  %v1693_v60 = vld [vmem:[%s1376_s26] ss:$0 sm:$0xff] }
 0x81d   : > { %v1211_v26 = vpack.c.bf16 %v1210_v24, %v1207_v21  ;;  %v1203_v27 = vpack.c.bf16 %v1199_v23, %v1201_v25 }
 0x81f   : > { %1691 = vmatprep.mubr.msk.bf16.mxu1 %vm1087_vm11, %v1211_v26 }
 0x88d   : > { %v1214_v29 = vpop.permute.xlu1 %1213 }
 0x88e   : > { %v1217_v30 = vsel %vm1087_vm11, %v1203_v27, %v1214_v29 }
 0x88f   : > { %1362 = vmatmul.mubr.bf16.vlgmr.msra.gmra.mxu1 %v1217_v30 }
 0x94f   : > { %v1363_v34 = vpop.f32.mrf.mxu1 }
 0x950   : > { %v1364_v35 = vadd.f32 %v1678_v1, %v1363_v34 }
 0x951   : > { %v1365_v31 = vpop.f32.mrf.mxu1 }
 0x952   : > { %v1370_v36 = vmul.f32 %v2248_v6, %v1364_v35 }
 0x953   : > { %v1366_v32 = vpop.f32.mrf.mxu1 }
 0x954   : > { %v1367_v2 = vadd.f32 %v1678_v1, %v1366_v32  ;;  %v1372_v37 = vadd.f32 %v1370_v36, %v2370_v28 }
 0x955   : > { %v1368_v38 = vpop.f32.mrf.mxu1 }
 0x956   : > { %v1371_v39 = vmul.f32 %v2251_v7, %v1367_v2  ;;  %v1378_v40 = vsel %vm609_vm5, %v1372_v37, 0.0 }
 0x957   : > { %1379 = vadd.xlane.f32.xlu1 %v1378_v40 }
 0x958   : > { %v1373_v41 = vadd.f32 %v1371_v39, %v2380_v33 }
 0x95a   : > { %v1381_v42 = vsel %vm609_vm5, %v1373_v41, 0.0 }
 0x95b   : > { %1382 = vadd.xlane.f32.xlu0 %v1381_v42 }
 0x9e0   : > { %v1380_v43 = vpop.xlane.xlu1 %1379 }
 0x9e1   : > { %v1384_v44 = vmul.f32 0.03125, %v1380_v43 }
 0x9e3   : > { %v1386_v45 = vsub.f32 %v1372_v37, %v1384_v44 }
 0x9e4   : > { %v1383_v46 = vpop.xlane.xlu0 %1382 }
 0x9e5   : > { %v1385_v47 = vmul.f32 0.03125, %v1383_v46  ;;  %v1388_v48 = vmul.f32 %v1386_v45, %v1386_v45 }
 0x9e7   : > { %v1387_v28 = vsub.f32 %v1373_v41, %v1385_v47  ;;  %v1390_v49 = vsel %vm609_vm5, %v1388_v48, 0.0 }
 0x9e8   : > { %1391 = vadd.xlane.f32.xlu0 %v1390_v49 }
 0x9e9   : > { %v1389_v50 = vmul.f32 %v1387_v28, %v1387_v28 }
 0x9eb   : > { %v1393_v51 = vsel %vm609_vm5, %v1389_v50, 0.0 }
 0x9ec   : > { %1394 = vadd.xlane.f32.xlu1 %v1393_v51 }
 0xa71   : > { %v1392_v33 = vpop.xlane.xlu0 %1391 }
 0xa72   : > { %v1396_v52 = vmul.f32 0.03125, %v1392_v33 }
 0xa74   : > { %v1398_v53 = vadd.f32 1e-05, %v1396_v52 }
 0xa75   : > { %v1395_v54 = vpop.xlane.xlu1 %1394 }
 0xa76   : > { %1933 = vrsqrt.f32 %v1398_v53  ;;  %v1397_v55 = vmul.f32 0.03125, %v1395_v54 }
 0xa78   : > { %v1399_v56 = vadd.f32 1e-05, %v1397_v55 }
 0xa7a   : > { %1935 = vrsqrt.f32 %v1399_v56 }
 0xa83   : > { %v1934_v57 = vpop.eup %1933 }
 0xa84   : > { %v1402_v59 = vmul.f32 %v1934_v57, %v1386_v45 }
 0xa86   : > { %v1410_v61 = vmul.f32 %v1692_v58, %v1402_v59 }
 0xa87   : > { %v1936_v62 = vpop.eup %1935 }
 0xa88   : > { %v1418_v63 = vadd.f32 %v1693_v60, %v1410_v61  ;;  %v1403_v0 = vmul.f32 %v1936_v62, %v1387_v28 }
 0xa8a   : > { %1420 = vst.msk [vmem:[#allocation2] sm:$0xff] %vm609_vm5, %v1418_v63  ;;  %v1411_v3 = vmul.f32 %v1692_v58, %v1403_v0  ;;  %1425 = sbr.rel (%p1694_p5) target bundleno = 2914 (0xb62), region = 88 }
 0xa8c   : > { %v1419_v15 = vadd.f32 %v1693_v60, %v1411_v3 }
 0xa8e   : > { %1421 = vst.msk [vmem:[#allocation2 + $0x8] sm:$0xff] %vm609_vm5, %v1419_v15 }
 0xa8f   : > { %v1937_v4 = vld [vmem:[%s2561_s14 + $0x8] sm:$0xff]   ;;  %v1426_v8 = vmul.f32 %v2248_v6, %v1418_v63  ;;  %v1427_v16 = vmul.f32 %v2251_v7, %v1419_v15  ;;  %v2059_v9 = vmov 0.0   ;;  %v1938_v10 = vld [vmem:[%s2561_s14] sm:$0xff]   ;;  %vm2060_vm13 = vmmov 0  }
 0xa90   : > { %1791 = vmatprep.subr.bf16.mxu0 %v2059_v9  ;;  %1795 = vmatprep.mubr.msk.bf16.mxu0 %vm2060_vm13, %v2059_v9  ;;  %v1695_v12 = vld [vmem:[%s2562_s15] ss:$0 sm:$0xff] }
 0xa91   : > { %1792 = vmatpush3.bf16.msra.mxu0 %v1937_v4  ;;  %1428 = vst.msk [vmem:[%s2255_s20] sm:$0xff] %vm609_vm5, %v1426_v8  ;;  %1429 = vst.msk [vmem:[%s2255_s20 + $0x8] sm:$0xff] %vm609_vm5, %v1427_v16  ;;  %v1430_v11 = vpack.c.bf16 %v1427_v16, %v1426_v8 }
 0xa92   : > { %1793 = vmatprep.subr.bf16.mxu0 %v2059_v9 }
 0xa95   : > { %1794 = vmatpush3.bf16.msra.mxu0 %v1938_v10 }
 0xa98   : > { %1796 = vmatmul.mubr.msk.bf16.vlgmr.msra.gmra.mxu0 %vm609_vm5, %v1430_v11 }
 0xb58   : > { %v1491_v13 = vpop.f32.mrf.mxu0 }
 0xb59   : > { %v1492_v14 = vadd.f32 %v1695_v12, %v1491_v13 }
 0xb5a   : > { %v1797_v17 = vpop.f32.mrf.mxu0 }
 0xb5b   : > { %v1498_v18 = vmul.f32 %v2248_v6, %v1492_v14 }
 0xb5c   : > { %v1494_v19 = vpop.f32.mrf.mxu0 }
 0xb5d   : > { %1500 = vst [vmem:[%s2243_s11] sm:$0xff] %v1498_v18  ;;  %v1495_v20 = vadd.f32 %v1695_v12, %v1494_v19 }
 0xb5e   : > { %v1798_v21 = vpop.f32.mrf.mxu0 }
 0xb5f   : > { %v1499_v22 = vmul.f32 %v2251_v7, %v1495_v20 }
 0xb61   : > { %1501 = vst [vmem:[%s2243_s11 + $0x8] sm:$0xff] %v1499_v22 }
 0xb62 PF: > { %s1710_s29 = sshll.u32 %s2033_s19, 8  ;;  %s1521_s23 = sshll.u32 %s2255_s20, 4  ;;  %s2492_s23 = int_to_ptr.vmem [resolvable:$true] %s1521_s23 }
 0xb63   : > { %s2489_s26 = scalar_lea.hbm %s2563_s16, %s1710_s29  ;;  %s2496_s24 = scalar_lea.sflag [#allocation6], %s532_s22 }
 0xb64   : > { %s1951_s11 = scalar_lea.vmem %s2492_s23, 256  ;;  %s2061_s19 = smov [#allocation5]  }
 0xb65   : > { %p1952_p6 = scmp.ne.s32.totalorder %s2492_s23, %s1951_s11  ;;  %s1955_s27 = sshll.u32 %s2061_s19, 4  ;;  %s1956_s27 = int_to_ptr.vmem [resolvable:$false] %s1955_s27 }
 0xb66   : > { %s1957_s21 = scalar_lea.vmem %s1956_s27, 512  ;;  %p1958_p10 = scmp.lt.s32.totalorder %s2492_s23, %s1956_s27 }
 0xb67   : > { %p1953_p7 = pnand %p1952_p6, %p2206_p8  ;;  %p1959_p11 = scmp.lt.s32.totalorder %s1957_s21, %s1951_s11 }
 0xb69   : > { %p1954_p9 = pneg %p1953_p7  ;;  %p1960_p12 = por %p1959_p11, %p1958_p10 }
 0xb6b   : > { %p1961_p13 = pnand %p1960_p12, %p1954_p9 }
 0xb6d   : > { %1964 = shalt.err (!%p1961_p13)
}
 0xb6e   : > { %s1965_s22 = scalar_lea.hbm %s2489_s26, 256  ;;  %s1969_s28 = scalar_lea.hbm %s2563_s16, 512 }
 0xb6f   : > { %p1966_p1 = scmp.ne.s32.totalorder %s2489_s26, %s1965_s22  ;;  %p1970_p4 = scmp.lt.s32.totalorder %s2489_s26, %s2563_s16 }
 0xb70   : > { %p1971_p5 = scmp.lt.s32.totalorder %s1969_s28, %s1965_s22 }
 0xb71   : > { %p1967_p2 = pnand %p1966_p1, %p2206_p8 }
 0xb72   : > { %p1972_p6 = por %p1971_p5, %p1970_p4 }
 0xb73   : > { %p1968_p3 = pneg %p1967_p2 }
 0xb75   : > { %p1973_p7 = pnand %p1972_p6, %p1968_p3 }
 0xb77   : > { %1976 = shalt.err (!%p1973_p7)
}
 0xb78   : > { %s2062_s1 = smov 128   ;;  %s2063_s11 = smov 8  }
 0xb79   : > { %1799 = dma.vmem_to_hbm [thread:$0]  (%p2206_p8), %s2492_s23, 256, %s2489_s26, %s2496_s24, %s2062_s1, %s2062_s1, %s2063_s11  }
 0xb7a PF: > { %s2590_s19 = sld [smem:[#allocation13_spill]] }
 0xb7b   : > { %s2591_s27 = sld [smem:[#allocation9_spill]] }
 0xb80   : > { %p1805_p9 = scmp.ge.s32.totalorder %s2590_s19, 2 }
 0xb81   : > { %s1539_s20 = sand.u32 1, %s2591_s27  }
 0xb82   : > { %p1802_p10 = pnand %p1805_p9, %p2216_p0  ;;  %s1540_s22 = scalar_lea.sflag [#allocation6], %s1539_s20 }
 0xb84   : > { %p1803_p11 = pneg %p1802_p10 }
 0xb86   : > { %2012 = dma.done.wait (%p1803_p11), %s1540_s22, 256  }
 0xb87   : > { %2014 = vsyncadd (%p1803_p11), %s1540_s22, 4294967040  ;;  %s37_s11 = sadd.s32 1, %s2590_s19   ;;  %s2593_s18 = sld [smem:[#allocation10_spill]] }
 0xb88   : > { %p34_p12 = scmp.ge.s32.totalorder %s37_s11, 6   ;;  %s2594_s30 = sld [smem:[#allocation17_spill]] }
 0xb89   : > { %s2595_s25 = sld [smem:[#allocation11_spill]]  ;;  %s2599_s29 = smov %s2021_s0 }
 0xb8a   : > { %s2596_s19 = sld [smem:[#allocation12_spill]] }
 0xb8b   : > { %s2597_s1 = sld [smem:[#allocation14_spill]]  ;;  %36 = sbr.rel (!%p34_p12) target bundleno = 29 (0x1d), region = 147 }
 0xb8c   : > { %s2598_s20 = sld [smem:[#allocation15_spill]] }
 0xb8d   : > { %s2600_s0 = smov %s2593_s18 }
 0xb8f   : > { %s2601_s18 = smov %s2595_s25 }
 0xb90   :  { %1553 = vsyncpa [#allocation6], 1 }
 0xb91   :  { %1555 = vsyncpa [#allocation6 + $0x1], 1 }

</bundles_post_ra>
